<compile_context>
chip_gen: v5e
topology: v5e:2x2
jax: 0.10.0
libtpu: 0.0.40
codegen_flags: <defaults>
</compile_context>

<pallas_src>
import jax
import jax.numpy as jnp
from jax.experimental import pallas as pl
from jax.experimental.pallas import tpu as pltpu

NEG_SLOPE = 0.01   # nn.LeakyReLU default
BN_EPS = 1e-5      # nn.BatchNorm2d default

_PARALLEL_1D = pltpu.CompilerParams(dimension_semantics=("parallel",))


# ---------------------------------------------------------------------------
# Weight re-packing (trace-time, tiny): convs as banded GEMM matrices.
# ---------------------------------------------------------------------------
def _band_conv_weight(w_pt, w):
    """(Cout, Cg, 3, 3) PyTorch conv weight (slice) -> (3, w*Cg, w*Cout).

    One banded matrix per vertical tap ky.  Row index = w_in*Cg + ci,
    col index = w_out*Cout + co, entry = W[co, ci, ky, kx] where
    w_in = w_out + kx - 1 (out-of-range entries are 0 == zero padding)."""
    cout, cg = w_pt.shape[0], w_pt.shape[1]
    wt = jnp.transpose(w_pt, (2, 3, 1, 0)).astype(jnp.float32)   # (ky, kx, Cg, Cout)
    mats = []
    for ky in range(3):
        m = jnp.zeros((w * cg, w * cout), jnp.float32)
        for kx in range(3):
            m = m + jnp.kron(jnp.eye(w, w, k=1 - kx, dtype=jnp.float32), wt[ky, kx])
        mats.append(m)
    return jnp.stack(mats)


def _upsample_weight(w_pt, w1):
    """(Cm, Co, 2, 2) ConvTranspose2d weight -> (w1*Cm, 4*w1*Co) GEMM matrix.

    Row index = j*Cm + ci, col index = di*(2*w1*Co) + (2*j + dj)*Co + co, so the
    GEMM output per input row is the pair of upsampled rows, already lane-dense."""
    cm, co = w_pt.shape[0], w_pt.shape[1]
    halves = []
    for di in range(2):
        m = jnp.zeros((w1 * cm, 2 * w1 * co), jnp.float32)
        for dj in range(2):
            onehot = jnp.zeros((1, 2), jnp.float32).at[0, dj].set(1.0)
            sel = jnp.kron(jnp.eye(w1, dtype=jnp.float32), onehot)       # (w1, 2*w1)
            m = m + jnp.kron(sel, w_pt[:, :, di, dj].astype(jnp.float32))
        halves.append(m)
    return jnp.concatenate(halves, axis=1)


# ---------------------------------------------------------------------------
# Kernels
# ---------------------------------------------------------------------------
def _up_kernel(x_ref, m_ref, b_ref, o_ref):
    # ConvTranspose2d(k=2, s=2) has no output overlap -> one GEMM per image.
    # x: (H1, W1*Cm), m: (W1*Cm, 4*W1*Co), out: (H1, 4*W1*Co)  (lane-dense).
    o_ref[0] = jnp.dot(x_ref[0], m_ref[...],
                       preferred_element_type=jnp.float32) + b_ref[...]


def _make_conv_kernel(h, widths, affine):
    """Fused: [optional BN+LeakyReLU of each input group] -> 3x3 conv (3 banded
    GEMMs, K = sum_g W*Cg) -> pre-BN output + per-image BN partial statistics.

    Conv bias is intentionally omitted: it is cancelled by the BN mean subtraction.
    """
    n_groups = len(widths)

    def kernel(*refs):
        idx = 0
        xs = []
        for g in range(n_groups):
            x = refs[idx][0]                       # (h, W*Cg) slab
            idx += 1
            if affine[g]:
                # fused BatchNorm(previous conv) + LeakyReLU applied on load
                x = x * refs[idx][...] + refs[idx + 1][...]
                x = jnp.where(x >= 0.0, x, NEG_SLOPE * x)
                idx += 2
            xs.append(x)
        w_ref = refs[idx]
        o_ref, st_ref = refs[idx + 1], refs[idx + 2]
        pad_ref = refs[idx + 3]                    # (h+2, sum_g W*Cg) VMEM scratch

        # zero the (row-) padded scratch, then write each channel group into its
        # own lane band (this is where the torch.cat is realized, in VMEM only).
        pad_ref[...] = jnp.zeros_like(pad_ref)
        off = 0
        for g in range(n_groups):
            pad_ref[1:h + 1, off:off + widths[g]] = xs[g]
            off += widths[g]

        # 3x3 conv == 3 banded GEMMs (one per vertical tap); default MXU precision.
        acc = jnp.dot(pad_ref[0:h, :], w_ref[0], preferred_element_type=jnp.float32)
        acc = acc + jnp.dot(pad_ref[1:h + 1, :], w_ref[1],
                            preferred_element_type=jnp.float32)
        acc = acc + jnp.dot(pad_ref[2:h + 2, :], w_ref[2],
                            preferred_element_type=jnp.float32)

        o_ref[0] = acc
        # per-image partial BatchNorm stats (sum, sum of squares) per lane
        st_ref[0, 0:1, :] = jnp.sum(acc, axis=0, keepdims=True)
        st_ref[0, 1:2, :] = jnp.sum(acc * acc, axis=0, keepdims=True)

    return kernel


def _bn_act_kernel(x_ref, sc_ref, sh_ref, o_ref):
    # final BatchNorm apply + LeakyReLU, lane-dense elementwise pass.
    y = x_ref[0] * sc_ref[...] + sh_ref[...]
    o_ref[0] = jnp.where(y >= 0.0, y, NEG_SLOPE * y)


# ---------------------------------------------------------------------------
# pallas_call wrappers
# ---------------------------------------------------------------------------
def _upsample(x1_nhwc, w_up, b_up):
    n, h1, w1, cm = x1_nhwc.shape
    co = w_up.shape[1]
    x_slab = x1_nhwc.reshape(n, h1, w1 * cm)             # free reshape
    m = _upsample_weight(w_up, w1)                       # (w1*cm, 4*w1*co)
    b = jnp.tile(b_up.astype(jnp.float32), 4 * w1).reshape(1, 4 * w1 * co)
    out = pl.pallas_call(
        _up_kernel,
        grid=(n,),
        in_specs=[pl.BlockSpec((1, h1, w1 * cm), lambda i: (i, 0, 0)),
                  pl.BlockSpec((w1 * cm, 4 * w1 * co), lambda i: (0, 0)),
                  pl.BlockSpec((1, 4 * w1 * co), lambda i: (0, 0))],
        out_specs=pl.BlockSpec((1, h1, 4 * w1 * co), lambda i: (i, 0, 0)),
        out_shape=jax.ShapeDtypeStruct((n, h1, 4 * w1 * co), jnp.float32),
        compiler_params=_PARALLEL_1D,
    )(x_slab, m, b)
    # rows come out ordered (h, di) -> free reshape into the upsampled slab
    return out.reshape(n, 2 * h1, 2 * w1 * co)


def _conv_bn_stats(groups, w_big, h, w, cout, affine, scales=(), shifts=()):
    """3x3 conv over channel-concatenated `groups` (+ optional fused BN/LeakyReLU
    on input groups) -> (pre-BN conv output slab, per-image BN partial stats)."""
    n = groups[0].shape[0]
    widths = tuple(g.shape[2] for g in groups)
    k_tot = sum(widths)

    args, in_specs = [], []
    for g, slab in enumerate(groups):
        args.append(slab)
        in_specs.append(pl.BlockSpec((1, h, widths[g]), lambda i: (i, 0, 0)))
        if affine[g]:
            args += [scales[g], shifts[g]]
            in_specs += [pl.BlockSpec((1, widths[g]), lambda i: (0, 0)),
                         pl.BlockSpec((1, widths[g]), lambda i: (0, 0))]
    args.append(w_big)
    in_specs.append(pl.BlockSpec((3, k_tot, w * cout), lambda i: (0, 0, 0)))

    conv, stats = pl.pallas_call(
        _make_conv_kernel(h, widths, affine),
        grid=(n,),
        in_specs=in_specs,
        out_specs=(pl.BlockSpec((1, h, w * cout), lambda i: (i, 0, 0)),
                   pl.BlockSpec((1, 2, w * cout), lambda i: (i, 0, 0))),
        out_shape=(jax.ShapeDtypeStruct((n, h, w * cout), jnp.float32),
                   jax.ShapeDtypeStruct((n, 2, w * cout), jnp.float32)),
        scratch_shapes=[pltpu.VMEM((h + 2, k_tot), jnp.float32)],
        compiler_params=_PARALLEL_1D,
    )(*args)
    return conv, stats


def _bn_scale_shift(stats, w, cout, count, gamma, beta):
    # cross-tile BN reduction (tiny): stats are per-image (sum, sum_sq) per lane.
    s = jnp.sum(stats, axis=0).reshape(2, w, cout).sum(axis=1)    # (2, cout)
    mean = s[0] / count
    var = s[1] / count - mean * mean       # biased variance (BN training mode)
    scale = gamma * jax.lax.rsqrt(var + BN_EPS)
    shift = beta - mean * scale
    return (jnp.tile(scale, w).reshape(1, w * cout),
            jnp.tile(shift, w).reshape(1, w * cout))


# ---------------------------------------------------------------------------
# `Up.forward(x1, x2)` — NCHW in / NCHW out (PyTorch convention).
# ---------------------------------------------------------------------------
def up_forward(x1_nchw, x2_nchw, params):
    x1 = jnp.transpose(x1_nchw, (0, 2, 3, 1))          # NHWC
    x2 = jnp.transpose(x2_nchw, (0, 2, 3, 1))
    n, h1, w1, cm = x1.shape
    h2, w2 = x2.shape[1], x2.shape[2]
    co_up = params["up_w"].shape[1]

    # -- ConvTranspose2d(k=2, s=2): one lane-dense GEMM per image --------------
    y = _upsample(x1, params["up_w"], params["up_b"])   # (n, 2*h1, 2*w1*co_up)

    # -- F.pad to x2's spatial size (static no-op in the usual U-Net case) -----
    dy, dx = h2 - 2 * h1, w2 - 2 * w1
    if dy or dx:
        y = y.reshape(n, 2 * h1, 2 * w1, co_up)
        y = jnp.pad(y, ((0, 0), (dy // 2, dy - dy // 2),
                        (dx // 2, dx - dx // 2), (0, 0)))
        y = y.reshape(n, h2, w2 * co_up)

    x2_slab = x2.reshape(n, h2, w2 * cm)                # free reshape to lane slab

    # -- conv1: torch.cat([x2, up(x1)], C) fused as two input groups -----------
    c1w = params["c1_w"]
    cout1 = c1w.shape[0]
    w_big1 = jnp.concatenate([_band_conv_weight(c1w[:, :cm], w2),
                              _band_conv_weight(c1w[:, cm:], w2)], axis=1)
    conv1, st1 = _conv_bn_stats([x2_slab, y], w_big1, h2, w2, cout1, (False, False))
    sc1, sh1 = _bn_scale_shift(st1, w2, cout1, n * h2 * w2,
                               params["g1"], params["be1"])

    # -- conv2: conv1's BatchNorm + LeakyReLU fused into its input stage -------
    c2w = params["c2_w"]
    cout2 = c2w.shape[0]
    w_big2 = _band_conv_weight(c2w, w2)
    conv2, st2 = _conv_bn_stats([conv1], w_big2, h2, w2, cout2, (True,),
                                scales=[sc1], shifts=[sh1])
    sc2, sh2 = _bn_scale_shift(st2, w2, cout2, n * h2 * w2,
                               params["g2"], params["be2"])

    # -- final BatchNorm + LeakyReLU (tiled, lane-dense elementwise pass) ------
    out = pl.pallas_call(
        _bn_act_kernel,
        grid=(n,),
        in_specs=[pl.BlockSpec((1, h2, w2 * cout2), lambda i: (i, 0, 0)),
                  pl.BlockSpec((1, w2 * cout2), lambda i: (0, 0)),
                  pl.BlockSpec((1, w2 * cout2), lambda i: (0, 0))],
        out_specs=pl.BlockSpec((1, h2, w2 * cout2), lambda i: (i, 0, 0)),
        out_shape=jax.ShapeDtypeStruct((n, h2, w2 * cout2), jnp.float32),
        compiler_params=_PARALLEL_1D,
    )(conv2, sc2, sh2)

    out = out.reshape(n, h2, w2, cout2)
    return jnp.transpose(out, (0, 3, 1, 2))             # back to NCHW


# ---------------------------------------------------------------------------
# Pure-JAX reference (ground truth, for the in-script correctness check only).
# ---------------------------------------------------------------------------
def _ref_conv_bn_lrelu(x, w_pt, b, gamma, beta):
    w = jnp.transpose(w_pt, (2, 3, 1, 0))               # HWIO
    y = jax.lax.conv_general_dilated(
        x, w, (1, 1), "SAME",
        dimension_numbers=("NHWC", "HWIO", "NHWC"),
        precision=jax.lax.Precision.HIGHEST) + b
    mean = jnp.mean(y, axis=(0, 1, 2), keepdims=True)
    var = jnp.mean((y - mean) ** 2, axis=(0, 1, 2), keepdims=True)
    y = (y - mean) * jax.lax.rsqrt(var + BN_EPS) * gamma + beta
    return jnp.where(y >= 0, y, NEG_SLOPE * y)


def up_reference(x1_nchw, x2_nchw, params):
    x1 = jnp.transpose(x1_nchw, (0, 2, 3, 1))
    x2 = jnp.transpose(x2_nchw, (0, 2, 3, 1))
    n, h1, w1, _ = x1.shape
    wt, bu = params["up_w"], params["up_b"]
    co = wt.shape[1]
    y = jnp.einsum("nhwc,coij->nhiwjo", x1, wt, precision=jax.lax.Precision.HIGHEST)
    y = y.reshape(n, 2 * h1, 2 * w1, co) + bu
    dy = x2.shape[1] - y.shape[1]
    dx = x2.shape[2] - y.shape[2]
    y = jnp.pad(y, ((0, 0), (dy // 2, dy - dy // 2), (dx // 2, dx - dx // 2), (0, 0)))
    x = jnp.concatenate([x2, y], axis=-1)
    x = _ref_conv_bn_lrelu(x, params["c1_w"], params["c1_b"], params["g1"], params["be1"])
    x = _ref_conv_bn_lrelu(x, params["c2_w"], params["c2_b"], params["g2"], params["be2"])
    return jnp.transpose(x, (0, 3, 1, 2))


if __name__ == "__main__":
    key = jax.random.PRNGKey(0)
    in_ch, out_ch = 16, 16
    N, H1, W1 = 2, 8, 8
    cm = in_ch // 2

    ks = jax.random.split(key, 12)
    params = {
        # ConvTranspose2d(in_ch//2, in_ch//2, k=2, s=2): weight (Cin, Cout, 2, 2)
        "up_w": 0.1 * jax.random.normal(ks[0], (cm, cm, 2, 2), jnp.float32),
        "up_b": 0.1 * jax.random.normal(ks[1], (cm,), jnp.float32),
        # DoubleConv(in_ch, out_ch); conv biases are cancelled by training-mode BN
        "c1_w": 0.1 * jax.random.normal(ks[2], (out_ch, in_ch, 3, 3), jnp.float32),
        "c1_b": 0.1 * jax.random.normal(ks[3], (out_ch,), jnp.float32),
        "g1": 1.0 + 0.1 * jax.random.normal(ks[4], (out_ch,), jnp.float32),
        "be1": 0.1 * jax.random.normal(ks[5], (out_ch,), jnp.float32),
        "c2_w": 0.1 * jax.random.normal(ks[6], (out_ch, out_ch, 3, 3), jnp.float32),
        "c2_b": 0.1 * jax.random.normal(ks[7], (out_ch,), jnp.float32),
        "g2": 1.0 + 0.1 * jax.random.normal(ks[8], (out_ch,), jnp.float32),
        "be2": 0.1 * jax.random.normal(ks[9], (out_ch,), jnp.float32),
    }

    x1 = jax.random.normal(ks[10], (N, cm, H1, W1), jnp.float32)          # NCHW
    x2 = jax.random.normal(ks[11], (N, cm, 2 * H1, 2 * W1), jnp.float32)  # NCHW

    out = jax.jit(up_forward)(x1, x2, params)
    out = jax.block_until_ready(out)

    ref = up_reference(x1, x2, params)
    assert out.shape == (N, out_ch, 2 * H1, 2 * W1), out.shape
    # Tolerance sized for default-precision (single bf16-pass) MXU matmuls per the
    # perf guidance; any indexing / layout bug would produce O(1) errors.
    err = float(jnp.max(jnp.abs(out - ref)))
    assert err < 5e-2, err
    print("KERNEL_OK")
</pallas_src>

<mosaic_0001>
module attributes {stable_mosaic.version = 11 : i64} {
  func.func @_up_kernel(%arg0: i32, %arg1: memref<1x8x64xf32, #tpu.memory_space<vmem>>, %arg2: memref<64x256xf32, #tpu.memory_space<vmem>>, %arg3: memref<1x256xf32, #tpu.memory_space<vmem>>, %arg4: memref<1x8x256xf32, #tpu.memory_space<vmem>>) attributes {dimension_semantics = [#tpu.dimension_semantics<parallel>], iteration_bounds = array<i64: 2>, scalar_prefetch = 0 : i64, scratch_operands = 0 : i64, tpu.core_type = #tpu.core_type<tc>, window_params = [{transform_indices = @transform_0, window_bounds = array<i64: 1, 8, 64>}, {pipeline_mode = #tpu.pipeline_mode<synchronous>, transform_indices = @transform_1, window_bounds = array<i64: 64, 256>}, {pipeline_mode = #tpu.pipeline_mode<synchronous>, transform_indices = @transform_2, window_bounds = array<i64: 1, 256>}, {transform_indices = @transform_3, window_bounds = array<i64: 1, 8, 256>}]} {
    %c0 = arith.constant 0 : index
    %c0_0 = arith.constant 0 : index
    %c0_1 = arith.constant 0 : index
    %0 = vector.load %arg1[%c0, %c0_0, %c0_1] : memref<1x8x64xf32, #tpu.memory_space<vmem>>, vector<1x8x64xf32>
    %1 = vector.shape_cast %0 : vector<1x8x64xf32> to vector<8x64xf32>
    %c0_2 = arith.constant 0 : index
    %c0_3 = arith.constant 0 : index
    %2 = vector.load %arg2[%c0_2, %c0_3] : memref<64x256xf32, #tpu.memory_space<vmem>>, vector<64x256xf32>
    %cst = arith.constant dense<0.000000e+00> : vector<8x256xf32>
    %3 = tpu.matmul %1, %2, %cst {dimension_numbers = #tpu.dot_dimension_numbers<[1], [0], [0], [1], [0, 0, 1, 1], [], []>} : vector<8x64xf32>, vector<64x256xf32>, vector<8x256xf32> -> vector<8x256xf32>
    %c0_4 = arith.constant 0 : index
    %c0_5 = arith.constant 0 : index
    %4 = vector.load %arg3[%c0_4, %c0_5] : memref<1x256xf32, #tpu.memory_space<vmem>>, vector<1x256xf32>
    %5 = vector.broadcast %4 : vector<1x256xf32> to vector<8x256xf32>
    %6 = arith.addf %3, %5 : vector<8x256xf32>
    %c0_6 = arith.constant 0 : index
    %c0_7 = arith.constant 0 : index
    %c0_8 = arith.constant 0 : index
    %7 = vector.load %arg4[%c0_6, %c0_7, %c0_8] : memref<1x8x256xf32, #tpu.memory_space<vmem>>, vector<1x8x256xf32>
    %8 = vector.shape_cast %7 : vector<1x8x256xf32> to vector<8x256xf32>
    %9 = vector.shape_cast %6 : vector<8x256xf32> to vector<1x8x256xf32>
    tpu.vector_store %arg4[%c0_6, %c0_7, %c0_8], %9 {strides = array<i32>} : memref<1x8x256xf32, #tpu.memory_space<vmem>>, vector<1x8x256xf32>,
    return
  }
  func.func @transform_0(%arg0: i32) -> (i32, i32, i32) {
    %c0_i32 = arith.constant 0 : i32
    %c0_i32_0 = arith.constant 0 : i32
    %c0_i32_1 = arith.constant 0 : i32
    return %arg0, %c0_i32, %c0_i32_0 : i32, i32, i32
  }
  func.func @transform_1(%arg0: i32) -> (i32, i32) {
    %c0_i32 = arith.constant 0 : i32
    %c0_i32_0 = arith.constant 0 : i32
    %c0_i32_1 = arith.constant 0 : i32
    return %c0_i32, %c0_i32_0 : i32, i32
  }
  func.func @transform_2(%arg0: i32) -> (i32, i32) {
    %c0_i32 = arith.constant 0 : i32
    %c0_i32_0 = arith.constant 0 : i32
    %c0_i32_1 = arith.constant 0 : i32
    return %c0_i32, %c0_i32_0 : i32, i32
  }
  func.func @transform_3(%arg0: i32) -> (i32, i32, i32) {
    %c0_i32 = arith.constant 0 : i32
    %c0_i32_0 = arith.constant 0 : i32
    %c0_i32_1 = arith.constant 0 : i32
    return %arg0, %c0_i32, %c0_i32_0 : i32, i32, i32
  }
}

module attributes {stable_mosaic.version = 11 : i64} {
  func.func @kernel(%arg0: i32, %arg1: memref<1x16x128xf32, #tpu.memory_space<vmem>>, %arg2: memref<1x16x128xf32, #tpu.memory_space<vmem>>, %arg3: memref<3x256x256xf32, #tpu.memory_space<vmem>>, %arg4: memref<1x16x256xf32, #tpu.memory_space<vmem>>, %arg5: memref<1x2x256xf32, #tpu.memory_space<vmem>>, %arg6: memref<18x256xf32, #tpu.memory_space<vmem>>) attributes {dimension_semantics = [#tpu.dimension_semantics<parallel>], iteration_bounds = array<i64: 2>, scalar_prefetch = 0 : i64, scratch_operands = 1 : i64, tpu.core_type = #tpu.core_type<tc>, window_params = [{transform_indices = @transform_0, window_bounds = array<i64: 1, 16, 128>}, {transform_indices = @transform_1, window_bounds = array<i64: 1, 16, 128>}, {pipeline_mode = #tpu.pipeline_mode<synchronous>, transform_indices = @transform_2, window_bounds = array<i64: 3, 256, 256>}, {transform_indices = @transform_3, window_bounds = array<i64: 1, 16, 256>}, {transform_indices = @transform_4, window_bounds = array<i64: 1, 2, 256>}]} {
    %c0 = arith.constant 0 : index
    %c0_0 = arith.constant 0 : index
    %c0_1 = arith.constant 0 : index
    %0 = vector.load %arg1[%c0, %c0_0, %c0_1] : memref<1x16x128xf32, #tpu.memory_space<vmem>>, vector<1x16x128xf32>
    %1 = vector.shape_cast %0 : vector<1x16x128xf32> to vector<16x128xf32>
    %c0_2 = arith.constant 0 : index
    %c0_3 = arith.constant 0 : index
    %c0_4 = arith.constant 0 : index
    %2 = vector.load %arg2[%c0_2, %c0_3, %c0_4] : memref<1x16x128xf32, #tpu.memory_space<vmem>>, vector<1x16x128xf32>
    %3 = vector.shape_cast %2 : vector<1x16x128xf32> to vector<16x128xf32>
    %cst = arith.constant 0.000000e+00 : f32
    %4 = vector.broadcast %cst : f32 to vector<18x256xf32>
    %c0_5 = arith.constant 0 : index
    %c0_6 = arith.constant 0 : index
    %5 = vector.load %arg6[%c0_5, %c0_6] : memref<18x256xf32, #tpu.memory_space<vmem>>, vector<18x256xf32>
    tpu.vector_store %arg6[%c0_5, %c0_6], %4 {strides = array<i32>} : memref<18x256xf32, #tpu.memory_space<vmem>>, vector<18x256xf32>,
    %c1 = arith.constant 1 : index
    %c0_7 = arith.constant 0 : index
    %6 = vector.load %arg6[%c1, %c0_7] : memref<18x256xf32, #tpu.memory_space<vmem>>, vector<16x128xf32>
    tpu.vector_store %arg6[%c1, %c0_7], %1 {strides = array<i32>} : memref<18x256xf32, #tpu.memory_space<vmem>>, vector<16x128xf32>,
    %c1_8 = arith.constant 1 : index
    %c128 = arith.constant 128 : index
    %7 = vector.load %arg6[%c1_8, %c128] : memref<18x256xf32, #tpu.memory_space<vmem>>, vector<16x128xf32>
    tpu.vector_store %arg6[%c1_8, %c128], %3 {strides = array<i32>} : memref<18x256xf32, #tpu.memory_space<vmem>>, vector<16x128xf32>,
    %c0_9 = arith.constant 0 : index
    %c0_10 = arith.constant 0 : index
    %8 = vector.load %arg6[%c0_9, %c0_10] : memref<18x256xf32, #tpu.memory_space<vmem>>, vector<16x256xf32>
    %c0_11 = arith.constant 0 : index
    %c0_12 = arith.constant 0 : index
    %c0_13 = arith.constant 0 : index
    %9 = vector.load %arg3[%c0_11, %c0_12, %c0_13] : memref<3x256x256xf32, #tpu.memory_space<vmem>>, vector<1x256x256xf32>
    %10 = vector.shape_cast %9 : vector<1x256x256xf32> to vector<256x256xf32>
    %cst_14 = arith.constant dense<0.000000e+00> : vector<16x256xf32>
    %11 = tpu.matmul %8, %10, %cst_14 {dimension_numbers = #tpu.dot_dimension_numbers<[1], [0], [0], [1], [0, 0, 1, 1], [], []>} : vector<16x256xf32>, vector<256x256xf32>, vector<16x256xf32> -> vector<16x256xf32>
    %c1_15 = arith.constant 1 : index
    %c0_16 = arith.constant 0 : index
    %12 = vector.load %arg6[%c1_15, %c0_16] : memref<18x256xf32, #tpu.memory_space<vmem>>, vector<16x256xf32>
    %c1_17 = arith.constant 1 : index
    %c0_18 = arith.constant 0 : index
    %c0_19 = arith.constant 0 : index
    %13 = vector.load %arg3[%c1_17, %c0_18, %c0_19] : memref<3x256x256xf32, #tpu.memory_space<vmem>>, vector<1x256x256xf32>
    %14 = vector.shape_cast %13 : vector<1x256x256xf32> to vector<256x256xf32>
    %cst_20 = arith.constant dense<0.000000e+00> : vector<16x256xf32>
    %15 = tpu.matmul %12, %14, %cst_20 {dimension_numbers = #tpu.dot_dimension_numbers<[1], [0], [0], [1], [0, 0, 1, 1], [], []>} : vector<16x256xf32>, vector<256x256xf32>, vector<16x256xf32> -> vector<16x256xf32>
    %16 = arith.addf %11, %15 : vector<16x256xf32>
    %c2 = arith.constant 2 : index
    %c0_21 = arith.constant 0 : index
    %17 = vector.load %arg6[%c2, %c0_21] : memref<18x256xf32, #tpu.memory_space<vmem>>, vector<16x256xf32>
    %c2_22 = arith.constant 2 : index
    %c0_23 = arith.constant 0 : index
    %c0_24 = arith.constant 0 : index
    %18 = vector.load %arg3[%c2_22, %c0_23, %c0_24] : memref<3x256x256xf32, #tpu.memory_space<vmem>>, vector<1x256x256xf32>
    %19 = vector.shape_cast %18 : vector<1x256x256xf32> to vector<256x256xf32>
    %cst_25 = arith.constant dense<0.000000e+00> : vector<16x256xf32>
    %20 = tpu.matmul %17, %19, %cst_25 {dimension_numbers = #tpu.dot_dimension_numbers<[1], [0], [0], [1], [0, 0, 1, 1], [], []>} : vector<16x256xf32>, vector<256x256xf32>, vector<16x256xf32> -> vector<16x256xf32>
    %21 = arith.addf %16, %20 : vector<16x256xf32>
    %c0_26 = arith.constant 0 : index
    %c0_27 = arith.constant 0 : index
    %c0_28 = arith.constant 0 : index
    %22 = vector.load %arg4[%c0_26, %c0_27, %c0_28] : memref<1x16x256xf32, #tpu.memory_space<vmem>>, vector<1x16x256xf32>
    %23 = vector.shape_cast %22 : vector<1x16x256xf32> to vector<16x256xf32>
    %24 = vector.shape_cast %21 : vector<16x256xf32> to vector<1x16x256xf32>
    tpu.vector_store %arg4[%c0_26, %c0_27, %c0_28], %24 {strides = array<i32>} : memref<1x16x256xf32, #tpu.memory_space<vmem>>, vector<1x16x256xf32>,
    %cst_29 = arith.constant dense<0.000000e+00> : vector<256xf32>
    %25 = vector.multi_reduction <add>, %21, %cst_29 [0] : vector<16x256xf32> to vector<256xf32>
    %26 = vector.shape_cast %25 : vector<256xf32> to vector<1x256xf32>
    %c0_30 = arith.constant 0 : index
    %c0_31 = arith.constant 0 : index
    %c0_32 = arith.constant 0 : index
    %27 = vector.load %arg5[%c0_30, %c0_31, %c0_32] : memref<1x2x256xf32, #tpu.memory_space<vmem>>, vector<1x1x256xf32>
    %28 = vector.shape_cast %27 : vector<1x1x256xf32> to vector<1x256xf32>
    %29 = vector.shape_cast %26 : vector<1x256xf32> to vector<1x1x256xf32>
    tpu.vector_store %arg5[%c0_30, %c0_31, %c0_32], %29 {strides = array<i32>} : memref<1x2x256xf32, #tpu.memory_space<vmem>>, vector<1x1x256xf32>,
    %30 = arith.mulf %21, %21 : vector<16x256xf32>
    %cst_33 = arith.constant dense<0.000000e+00> : vector<256xf32>
    %31 = vector.multi_reduction <add>, %30, %cst_33 [0] : vector<16x256xf32> to vector<256xf32>
    %32 = vector.shape_cast %31 : vector<256xf32> to vector<1x256xf32>
    %c0_34 = arith.constant 0 : index
    %c1_35 = arith.constant 1 : index
    %c0_36 = arith.constant 0 : index
    %33 = vector.load %arg5[%c0_34, %c1_35, %c0_36] : memref<1x2x256xf32, #tpu.memory_space<vmem>>, vector<1x1x256xf32>
    %34 = vector.shape_cast %33 : vector<1x1x256xf32> to vector<1x256xf32>
    %35 = vector.shape_cast %32 : vector<1x256xf32> to vector<1x1x256xf32>
    tpu.vector_store %arg5[%c0_34, %c1_35, %c0_36], %35 {strides = array<i32>} : memref<1x2x256xf32, #tpu.memory_space<vmem>>, vector<1x1x256xf32>,
    return
  }
  func.func @transform_0(%arg0: i32) -> (i32, i32, i32) {
    %c0_i32 = arith.constant 0 : i32
    %c0_i32_0 = arith.constant 0 : i32
    %c0_i32_1 = arith.constant 0 : i32
    return %arg0, %c0_i32, %c0_i32_0 : i32, i32, i32
  }
  func.func @transform_1(%arg0: i32) -> (i32, i32, i32) {
    %c0_i32 = arith.constant 0 : i32
    %c0_i32_0 = arith.constant 0 : i32
    %c0_i32_1 = arith.constant 0 : i32
    return %arg0, %c0_i32, %c0_i32_0 : i32, i32, i32
  }
  func.func @transform_2(%arg0: i32) -> (i32, i32, i32) {
    %c0_i32 = arith.constant 0 : i32
    %c0_i32_0 = arith.constant 0 : i32
    %c0_i32_1 = arith.constant 0 : i32
    %c0_i32_2 = arith.constant 0 : i32
    return %c0_i32, %c0_i32_0, %c0_i32_1 : i32, i32, i32
  }
  func.func @transform_3(%arg0: i32) -> (i32, i32, i32) {
    %c0_i32 = arith.constant 0 : i32
    %c0_i32_0 = arith.constant 0 : i32
    %c0_i32_1 = arith.constant 0 : i32
    return %arg0, %c0_i32, %c0_i32_0 : i32, i32, i32
  }
  func.func @transform_4(%arg0: i32) -> (i32, i32, i32) {
    %c0_i32 = arith.constant 0 : i32
    %c0_i32_0 = arith.constant 0 : i32
    %c0_i32_1 = arith.constant 0 : i32
    return %arg0, %c0_i32, %c0_i32_0 : i32, i32, i32
  }
}

module attributes {stable_mosaic.version = 11 : i64} {
  func.func @kernel(%arg0: i32, %arg1: memref<1x16x256xf32, #tpu.memory_space<vmem>>, %arg2: memref<1x256xf32, #tpu.memory_space<vmem>>, %arg3: memref<1x256xf32, #tpu.memory_space<vmem>>, %arg4: memref<3x256x256xf32, #tpu.memory_space<vmem>>, %arg5: memref<1x16x256xf32, #tpu.memory_space<vmem>>, %arg6: memref<1x2x256xf32, #tpu.memory_space<vmem>>, %arg7: memref<18x256xf32, #tpu.memory_space<vmem>>) attributes {dimension_semantics = [#tpu.dimension_semantics<parallel>], iteration_bounds = array<i64: 2>, scalar_prefetch = 0 : i64, scratch_operands = 1 : i64, tpu.core_type = #tpu.core_type<tc>, window_params = [{transform_indices = @transform_0, window_bounds = array<i64: 1, 16, 256>}, {pipeline_mode = #tpu.pipeline_mode<synchronous>, transform_indices = @transform_1, window_bounds = array<i64: 1, 256>}, {pipeline_mode = #tpu.pipeline_mode<synchronous>, transform_indices = @transform_2, window_bounds = array<i64: 1, 256>}, {pipeline_mode = #tpu.pipeline_mode<synchronous>, transform_indices = @transform_3, window_bounds = array<i64: 3, 256, 256>}, {transform_indices = @transform_4, window_bounds = array<i64: 1, 16, 256>}, {transform_indices = @transform_5, window_bounds = array<i64: 1, 2, 256>}]} {
    %c0 = arith.constant 0 : index
    %c0_0 = arith.constant 0 : index
    %c0_1 = arith.constant 0 : index
    %0 = vector.load %arg1[%c0, %c0_0, %c0_1] : memref<1x16x256xf32, #tpu.memory_space<vmem>>, vector<1x16x256xf32>
    %1 = vector.shape_cast %0 : vector<1x16x256xf32> to vector<16x256xf32>
    %c0_2 = arith.constant 0 : index
    %c0_3 = arith.constant 0 : index
    %2 = vector.load %arg2[%c0_2, %c0_3] : memref<1x256xf32, #tpu.memory_space<vmem>>, vector<1x256xf32>
    %3 = vector.broadcast %2 : vector<1x256xf32> to vector<16x256xf32>
    %4 = arith.mulf %1, %3 : vector<16x256xf32>
    %c0_4 = arith.constant 0 : index
    %c0_5 = arith.constant 0 : index
    %5 = vector.load %arg3[%c0_4, %c0_5] : memref<1x256xf32, #tpu.memory_space<vmem>>, vector<1x256xf32>
    %6 = vector.broadcast %5 : vector<1x256xf32> to vector<16x256xf32>
    %7 = arith.addf %4, %6 : vector<16x256xf32>
    %cst = arith.constant 0.000000e+00 : f32
    %8 = vector.broadcast %cst : f32 to vector<16x256xf32>
    %9 = arith.cmpf oge, %7, %8 : vector<16x256xf32>
    %cst_6 = arith.constant 0.00999999977 : f32
    %10 = vector.broadcast %cst_6 : f32 to vector<16x256xf32>
    %11 = arith.mulf %10, %7 : vector<16x256xf32>
    %12 = arith.select %9, %7, %11 : vector<16x256xi1>, vector<16x256xf32>
    %cst_7 = arith.constant 0.000000e+00 : f32
    %13 = vector.broadcast %cst_7 : f32 to vector<18x256xf32>
    %c0_8 = arith.constant 0 : index
    %c0_9 = arith.constant 0 : index
    %14 = vector.load %arg7[%c0_8, %c0_9] : memref<18x256xf32, #tpu.memory_space<vmem>>, vector<18x256xf32>
    tpu.vector_store %arg7[%c0_8, %c0_9], %13 {strides = array<i32>} : memref<18x256xf32, #tpu.memory_space<vmem>>, vector<18x256xf32>,
    %c1 = arith.constant 1 : index
    %c0_10 = arith.constant 0 : index
    %15 = vector.load %arg7[%c1, %c0_10] : memref<18x256xf32, #tpu.memory_space<vmem>>, vector<16x256xf32>
    tpu.vector_store %arg7[%c1, %c0_10], %12 {strides = array<i32>} : memref<18x256xf32, #tpu.memory_space<vmem>>, vector<16x256xf32>,
    %c0_11 = arith.constant 0 : index
    %c0_12 = arith.constant 0 : index
    %16 = vector.load %arg7[%c0_11, %c0_12] : memref<18x256xf32, #tpu.memory_space<vmem>>, vector<16x256xf32>
    %c0_13 = arith.constant 0 : index
    %c0_14 = arith.constant 0 : index
    %c0_15 = arith.constant 0 : index
    %17 = vector.load %arg4[%c0_13, %c0_14, %c0_15] : memref<3x256x256xf32, #tpu.memory_space<vmem>>, vector<1x256x256xf32>
    %18 = vector.shape_cast %17 : vector<1x256x256xf32> to vector<256x256xf32>
    %cst_16 = arith.constant dense<0.000000e+00> : vector<16x256xf32>
    %19 = tpu.matmul %16, %18, %cst_16 {dimension_numbers = #tpu.dot_dimension_numbers<[1], [0], [0], [1], [0, 0, 1, 1], [], []>} : vector<16x256xf32>, vector<256x256xf32>, vector<16x256xf32> -> vector<16x256xf32>
    %c1_17 = arith.constant 1 : index
    %c0_18 = arith.constant 0 : index
    %20 = vector.load %arg7[%c1_17, %c0_18] : memref<18x256xf32, #tpu.memory_space<vmem>>, vector<16x256xf32>
    %c1_19 = arith.constant 1 : index
    %c0_20 = arith.constant 0 : index
    %c0_21 = arith.constant 0 : index
    %21 = vector.load %arg4[%c1_19, %c0_20, %c0_21] : memref<3x256x256xf32, #tpu.memory_space<vmem>>, vector<1x256x256xf32>
    %22 = vector.shape_cast %21 : vector<1x256x256xf32> to vector<256x256xf32>
    %cst_22 = arith.constant dense<0.000000e+00> : vector<16x256xf32>
    %23 = tpu.matmul %20, %22, %cst_22 {dimension_numbers = #tpu.dot_dimension_numbers<[1], [0], [0], [1], [0, 0, 1, 1], [], []>} : vector<16x256xf32>, vector<256x256xf32>, vector<16x256xf32> -> vector<16x256xf32>
    %24 = arith.addf %19, %23 : vector<16x256xf32>
    %c2 = arith.constant 2 : index
    %c0_23 = arith.constant 0 : index
    %25 = vector.load %arg7[%c2, %c0_23] : memref<18x256xf32, #tpu.memory_space<vmem>>, vector<16x256xf32>
    %c2_24 = arith.constant 2 : index
    %c0_25 = arith.constant 0 : index
    %c0_26 = arith.constant 0 : index
    %26 = vector.load %arg4[%c2_24, %c0_25, %c0_26] : memref<3x256x256xf32, #tpu.memory_space<vmem>>, vector<1x256x256xf32>
    %27 = vector.shape_cast %26 : vector<1x256x256xf32> to vector<256x256xf32>
    %cst_27 = arith.constant dense<0.000000e+00> : vector<16x256xf32>
    %28 = tpu.matmul %25, %27, %cst_27 {dimension_numbers = #tpu.dot_dimension_numbers<[1], [0], [0], [1], [0, 0, 1, 1], [], []>} : vector<16x256xf32>, vector<256x256xf32>, vector<16x256xf32> -> vector<16x256xf32>
    %29 = arith.addf %24, %28 : vector<16x256xf32>
    %c0_28 = arith.constant 0 : index
    %c0_29 = arith.constant 0 : index
    %c0_30 = arith.constant 0 : index
    %30 = vector.load %arg5[%c0_28, %c0_29, %c0_30] : memref<1x16x256xf32, #tpu.memory_space<vmem>>, vector<1x16x256xf32>
    %31 = vector.shape_cast %30 : vector<1x16x256xf32> to vector<16x256xf32>
    %32 = vector.shape_cast %29 : vector<16x256xf32> to vector<1x16x256xf32>
    tpu.vector_store %arg5[%c0_28, %c0_29, %c0_30], %32 {strides = array<i32>} : memref<1x16x256xf32, #tpu.memory_space<vmem>>, vector<1x16x256xf32>,
    %cst_31 = arith.constant dense<0.000000e+00> : vector<256xf32>
    %33 = vector.multi_reduction <add>, %29, %cst_31 [0] : vector<16x256xf32> to vector<256xf32>
    %34 = vector.shape_cast %33 : vector<256xf32> to vector<1x256xf32>
    %c0_32 = arith.constant 0 : index
    %c0_33 = arith.constant 0 : index
    %c0_34 = arith.constant 0 : index
    %35 = vector.load %arg6[%c0_32, %c0_33, %c0_34] : memref<1x2x256xf32, #tpu.memory_space<vmem>>, vector<1x1x256xf32>
    %36 = vector.shape_cast %35 : vector<1x1x256xf32> to vector<1x256xf32>
    %37 = vector.shape_cast %34 : vector<1x256xf32> to vector<1x1x256xf32>
    tpu.vector_store %arg6[%c0_32, %c0_33, %c0_34], %37 {strides = array<i32>} : memref<1x2x256xf32, #tpu.memory_space<vmem>>, vector<1x1x256xf32>,
    %38 = arith.mulf %29, %29 : vector<16x256xf32>
    %cst_35 = arith.constant dense<0.000000e+00> : vector<256xf32>
    %39 = vector.multi_reduction <add>, %38, %cst_35 [0] : vector<16x256xf32> to vector<256xf32>
    %40 = vector.shape_cast %39 : vector<256xf32> to vector<1x256xf32>
    %c0_36 = arith.constant 0 : index
    %c1_37 = arith.constant 1 : index
    %c0_38 = arith.constant 0 : index
    %41 = vector.load %arg6[%c0_36, %c1_37, %c0_38] : memref<1x2x256xf32, #tpu.memory_space<vmem>>, vector<1x1x256xf32>
    %42 = vector.shape_cast %41 : vector<1x1x256xf32> to vector<1x256xf32>
    %43 = vector.shape_cast %40 : vector<1x256xf32> to vector<1x1x256xf32>
    tpu.vector_store %arg6[%c0_36, %c1_37, %c0_38], %43 {strides = array<i32>} : memref<1x2x256xf32, #tpu.memory_space<vmem>>, vector<1x1x256xf32>,
    return
  }
  func.func @transform_0(%arg0: i32) -> (i32, i32, i32) {
    %c0_i32 = arith.constant 0 : i32
    %c0_i32_0 = arith.constant 0 : i32
    %c0_i32_1 = arith.constant 0 : i32
    return %arg0, %c0_i32, %c0_i32_0 : i32, i32, i32
  }
  func.func @transform_1(%arg0: i32) -> (i32, i32) {
    %c0_i32 = arith.constant 0 : i32
    %c0_i32_0 = arith.constant 0 : i32
    %c0_i32_1 = arith.constant 0 : i32
    return %c0_i32, %c0_i32_0 : i32, i32
  }
  func.func @transform_2(%arg0: i32) -> (i32, i32) {
    %c0_i32 = arith.constant 0 : i32
    %c0_i32_0 = arith.constant 0 : i32
    %c0_i32_1 = arith.constant 0 : i32
    return %c0_i32, %c0_i32_0 : i32, i32
  }
  func.func @transform_3(%arg0: i32) -> (i32, i32, i32) {
    %c0_i32 = arith.constant 0 : i32
    %c0_i32_0 = arith.constant 0 : i32
    %c0_i32_1 = arith.constant 0 : i32
    %c0_i32_2 = arith.constant 0 : i32
    return %c0_i32, %c0_i32_0, %c0_i32_1 : i32, i32, i32
  }
  func.func @transform_4(%arg0: i32) -> (i32, i32, i32) {
    %c0_i32 = arith.constant 0 : i32
    %c0_i32_0 = arith.constant 0 : i32
    %c0_i32_1 = arith.constant 0 : i32
    return %arg0, %c0_i32, %c0_i32_0 : i32, i32, i32
  }
  func.func @transform_5(%arg0: i32) -> (i32, i32, i32) {
    %c0_i32 = arith.constant 0 : i32
    %c0_i32_0 = arith.constant 0 : i32
    %c0_i32_1 = arith.constant 0 : i32
    return %arg0, %c0_i32, %c0_i32_0 : i32, i32, i32
  }
}

module attributes {stable_mosaic.version = 11 : i64} {
  func.func @_bn_act_kernel(%arg0: i32, %arg1: memref<1x16x256xf32, #tpu.memory_space<vmem>>, %arg2: memref<1x256xf32, #tpu.memory_space<vmem>>, %arg3: memref<1x256xf32, #tpu.memory_space<vmem>>, %arg4: memref<1x16x256xf32, #tpu.memory_space<vmem>>) attributes {dimension_semantics = [#tpu.dimension_semantics<parallel>], iteration_bounds = array<i64: 2>, scalar_prefetch = 0 : i64, scratch_operands = 0 : i64, tpu.core_type = #tpu.core_type<tc>, window_params = [{transform_indices = @transform_0, window_bounds = array<i64: 1, 16, 256>}, {pipeline_mode = #tpu.pipeline_mode<synchronous>, transform_indices = @transform_1, window_bounds = array<i64: 1, 256>}, {pipeline_mode = #tpu.pipeline_mode<synchronous>, transform_indices = @transform_2, window_bounds = array<i64: 1, 256>}, {transform_indices = @transform_3, window_bounds = array<i64: 1, 16, 256>}]} {
    %c0 = arith.constant 0 : index
    %c0_0 = arith.constant 0 : index
    %c0_1 = arith.constant 0 : index
    %0 = vector.load %arg1[%c0, %c0_0, %c0_1] : memref<1x16x256xf32, #tpu.memory_space<vmem>>, vector<1x16x256xf32>
    %1 = vector.shape_cast %0 : vector<1x16x256xf32> to vector<16x256xf32>
    %c0_2 = arith.constant 0 : index
    %c0_3 = arith.constant 0 : index
    %2 = vector.load %arg2[%c0_2, %c0_3] : memref<1x256xf32, #tpu.memory_space<vmem>>, vector<1x256xf32>
    %3 = vector.broadcast %2 : vector<1x256xf32> to vector<16x256xf32>
    %4 = arith.mulf %1, %3 : vector<16x256xf32>
    %c0_4 = arith.constant 0 : index
    %c0_5 = arith.constant 0 : index
    %5 = vector.load %arg3[%c0_4, %c0_5] : memref<1x256xf32, #tpu.memory_space<vmem>>, vector<1x256xf32>
    %6 = vector.broadcast %5 : vector<1x256xf32> to vector<16x256xf32>
    %7 = arith.addf %4, %6 : vector<16x256xf32>
    %cst = arith.constant 0.000000e+00 : f32
    %8 = vector.broadcast %cst : f32 to vector<16x256xf32>
    %9 = arith.cmpf oge, %7, %8 : vector<16x256xf32>
    %cst_6 = arith.constant 0.00999999977 : f32
    %10 = vector.broadcast %cst_6 : f32 to vector<16x256xf32>
    %11 = arith.mulf %10, %7 : vector<16x256xf32>
    %12 = arith.select %9, %7, %11 : vector<16x256xi1>, vector<16x256xf32>
    %c0_7 = arith.constant 0 : index
    %c0_8 = arith.constant 0 : index
    %c0_9 = arith.constant 0 : index
    %13 = vector.load %arg4[%c0_7, %c0_8, %c0_9] : memref<1x16x256xf32, #tpu.memory_space<vmem>>, vector<1x16x256xf32>
    %14 = vector.shape_cast %13 : vector<1x16x256xf32> to vector<16x256xf32>
    %15 = vector.shape_cast %12 : vector<16x256xf32> to vector<1x16x256xf32>
    tpu.vector_store %arg4[%c0_7, %c0_8, %c0_9], %15 {strides = array<i32>} : memref<1x16x256xf32, #tpu.memory_space<vmem>>, vector<1x16x256xf32>,
    return
  }
  func.func @transform_0(%arg0: i32) -> (i32, i32, i32) {
    %c0_i32 = arith.constant 0 : i32
    %c0_i32_0 = arith.constant 0 : i32
    %c0_i32_1 = arith.constant 0 : i32
    return %arg0, %c0_i32, %c0_i32_0 : i32, i32, i32
  }
  func.func @transform_1(%arg0: i32) -> (i32, i32) {
    %c0_i32 = arith.constant 0 : i32
    %c0_i32_0 = arith.constant 0 : i32
    %c0_i32_1 = arith.constant 0 : i32
    return %c0_i32, %c0_i32_0 : i32, i32
  }
  func.func @transform_2(%arg0: i32) -> (i32, i32) {
    %c0_i32 = arith.constant 0 : i32
    %c0_i32_0 = arith.constant 0 : i32
    %c0_i32_1 = arith.constant 0 : i32
    return %c0_i32, %c0_i32_0 : i32, i32
  }
  func.func @transform_3(%arg0: i32) -> (i32, i32, i32) {
    %c0_i32 = arith.constant 0 : i32
    %c0_i32_0 = arith.constant 0 : i32
    %c0_i32_1 = arith.constant 0 : i32
    return %arg0, %c0_i32, %c0_i32_0 : i32, i32, i32
  }
}

</mosaic_0001>

<bundles_post_ra>
// kernel: tile.28
= control target key start
LH: loop header
LB: loop body
LE: loop exit
PB: predicated region body
PF: predicated region fallthrough
CT: control target
= control target key end

     0   :  { %s40_s0 = inlined_call_operand.vmem [shape: f32[8], index: 0, kind: input, shape index: {}]   ;;  %s41_s1 = inlined_call_operand.vmem [shape: f32[32,8], index: 1, kind: output, shape index: {}]  }
   0x1   :  { %v4_v0 = vld [vmem:[%s40_s0] ss:$0 sm:$0xff] }
   0x2   :  { %5 = vst [vmem:[%s41_s1] sm:$0xff] %v4_v0 }
   0x3   :  { %12 = vst [vmem:[%s41_s1 + $0x8] sm:$0xff] %v4_v0 }
   0x4   :  { %13 = vst [vmem:[%s41_s1 + $0x10] sm:$0xff] %v4_v0 }
   0x5   :  { %14 = vst [vmem:[%s41_s1 + $0x18] sm:$0xff] %v4_v0 }

// kernel: tile.29
= control target key start
LH: loop header
LB: loop body
LE: loop exit
PB: predicated region body
PF: predicated region fallthrough
CT: control target
= control target key end

     0   :  { %s7_s6 = smov 3  ;;  %s21_s9 = smov 3  ;;  %vm4_vm0 = vcmask 64512   ;;  %vm11_vm1 = vcmask 1048512   ;;  %vm18_vm2 = vcmask 982912   ;;  %vm25_vm3 = vcmask 917312   ;;  %s233_s0 = inlined_call_operand.vmem [shape: f32[32,8], index: 0, kind: input, shape index: {}]   ;;  %s234_s1 = inlined_call_operand.vmem [shape: f32[1,256], index: 1, kind: output, shape index: {}]  }
   0x1   :  { %v123_v0 = vld [vmem:[%s233_s0 + $0xf] ss:$16 sm:%s7_s6]   ;;  %s154_s10 = smov 120   ;;  %v125_v1 = vld [vmem:[%s233_s0 + $0xd] ss:$16 sm:%s21_s9]   ;;  %s155_s13 = smov 104  }
   0x2   :  { %9 = vrot.lane.b32.xlu0 %v123_v0, %s154_s10  ;;  %23 = vrot.lane.b32.xlu1 %v125_v1, %s155_s13  ;;  %s14_s14 = smov 3  ;;  %s28_s15 = smov 3  ;;  %vm32_vm4 = vcmask 851712   ;;  %vm39_vm5 = vcmask 786112   ;;  %vm46_vm6 = vcmask 720512   ;;  %vm53_vm7 = vcmask 654912  }
   0x3   :  { %v124_v2 = vld [vmem:[%s233_s0 + $0xe] ss:$16 sm:%s14_s14]   ;;  %v126_v3 = vld [vmem:[%s233_s0 + $0xc] ss:$16 sm:%s28_s15]   ;;  %s35_s20 = smov 3  ;;  %s156_s23 = smov 112  }
   0x4   :  { %v127_v4 = vld [vmem:[%s233_s0 + $0xb] ss:$16 sm:%s35_s20]   ;;  %s157_s24 = smov 88   ;;  %s158_s25 = smov 96   ;;  %vm60_vm8 = vcmask 589312   ;;  %vm67_vm9 = vcmask 523712  }
   0x5   :  { %37 = vrot.lane.b32.xlu2 %v127_v4, %s157_s24  ;;  %s49_s26 = smov 3  ;;  %s42_s27 = smov 3  ;;  %vm74_vm10 = vcmask 458112   ;;  %vm81_vm11 = vcmask 392512   ;;  %vm88_vm12 = vcmask 326912   ;;  %vm95_vm13 = vcmask 261312  }
   0x6   :  { %s56_s28 = smov 3  ;;  %v129_v5 = vld [vmem:[%s233_s0 + $0x9] ss:$16 sm:%s49_s26]   ;;  %v128_v6 = vld [vmem:[%s233_s0 + $0xa] ss:$16 sm:%s42_s27]   ;;  %s159_s6 = smov 72  }
   0x7   :  { %v130_v7 = vld [vmem:[%s233_s0 + $0x8] ss:$16 sm:%s56_s28]   ;;  %s160_s7 = smov 80   ;;  %s161_s8 = smov 64   ;;  %vm102_vm14 = vcmask 195712   ;;  %vm109_vm15 = vcmask 130112  }
   0x8   :  { %s70_s9 = smov 3  ;;  %s63_s10 = smov 3 }
   0x9   :  { %s77_s11 = smov 3  ;;  %v132_v8 = vld [vmem:[%s233_s0 + $0x6] ss:$16 sm:%s70_s9]   ;;  %v131_v9 = vld [vmem:[%s233_s0 + $0x7] ss:$16 sm:%s63_s10]   ;;  %s162_s18 = smov 48  }
   0xa   :  { %16 = vrot.lane.b32.xlu0 %v124_v2, %s156_s23  ;;  %30 = vrot.lane.b32.xlu1 %v126_v3, %s158_s25  ;;  %v133_v10 = vld [vmem:[%s233_s0 + $0x5] ss:$16 sm:%s77_s11]   ;;  %s163_s19 = smov 56   ;;  %s164_s20 = smov 40  }
   0xb   :  { %s91_s21 = smov 3  ;;  %s84_s22 = smov 3 }
   0xc   :  { %s98_s23 = smov 3  ;;  %v135_v11 = vld [vmem:[%s233_s0 + $0x3] ss:$16 sm:%s91_s21]   ;;  %v134_v12 = vld [vmem:[%s233_s0 + $0x4] ss:$16 sm:%s84_s22]   ;;  %s165_s30 = smov 24  }
   0xd   :  { %44 = vrot.lane.b32.xlu2 %v128_v6, %s160_s7  ;;  %v136_v13 = vld [vmem:[%s233_s0 + $0x2] ss:$16 sm:%s98_s23]   ;;  %s166_s2 = smov 32   ;;  %s167_s3 = smov 16  }
   0xe   :  { %s105_s4 = smov 3  ;;  %s168_s7 = smov 8  }
   0xf   :  { %v137_v14 = vld [vmem:[%s233_s0 + $0x1] ss:$16 sm:%s105_s4]  }
  0x12   :  { %51 = vrot.lane.b32.xlu0 %v129_v5, %s159_s6  ;;  %58 = vrot.lane.b32.xlu1 %v130_v7, %s161_s8  ;;  %s2_s8 = smov 3 }
  0x13   :  { %v3_v15 = vld [vmem:[%s233_s0] ss:$16 sm:%s2_s8]  }
  0x14   :  { %5 = vst.msk [vmem:[#allocation0] ss:$8 sm:$0x3] %vm4_vm0, %v3_v15  }
  0x15   :  { %65 = vrot.lane.b32.xlu2 %v131_v9, %s163_s19 }
  0x1a   :  { %72 = vrot.lane.b32.xlu0 %v132_v8, %s162_s18  ;;  %79 = vrot.lane.b32.xlu1 %v133_v10, %s164_s20 }
  0x1d   :  { %86 = vrot.lane.b32.xlu2 %v134_v12, %s166_s2 }
  0x22   :  { %93 = vrot.lane.b32.xlu0 %v135_v11, %s165_s30  ;;  %100 = vrot.lane.b32.xlu1 %v136_v13, %s167_s3 }
  0x25   :  { %107 = vrot.lane.b32.xlu2 %v137_v14, %s168_s7 }
  0x5f   :  { %v38_v16 = vpop.permute.xlu2 %37  }
  0x67   :  { %v45_v17 = vpop.permute.xlu2 %44  }
  0x6f   :  { %v66_v19 = vpop.permute.xlu2 %65  }
  0x74   :  { %v10_v18 = vpop.permute.xlu0 %9   ;;  %v24_v20 = vpop.permute.xlu1 %23  }
  0x75   :  { %12 = vst.msk [vmem:[#allocation0] ss:$8 sm:$0x3] %vm11_vm1, %v10_v18  }
  0x77   :  { %v87_v22 = vpop.permute.xlu2 %86  }
  0x7c   :  { %v17_v21 = vpop.permute.xlu0 %16   ;;  %v31_v23 = vpop.permute.xlu1 %30  }
  0x7d   :  { %19 = vst.msk [vmem:[#allocation0] ss:$8 sm:$0x3] %vm18_vm2, %v17_v21  }
  0x7e   :  { %26 = vst.msk [vmem:[#allocation0] ss:$8 sm:$0x3] %vm25_vm3, %v24_v20  }
  0x7f   :  { %33 = vst.msk [vmem:[#allocation0] ss:$8 sm:$0x3] %vm32_vm4, %v31_v23   ;;  %v108_v25 = vpop.permute.xlu2 %107  }
  0x80   :  { %40 = vst.msk [vmem:[#allocation0] ss:$8 sm:$0x3] %vm39_vm5, %v38_v16  }
  0x81   :  { %47 = vst.msk [vmem:[#allocation0] ss:$8 sm:$0x3] %vm46_vm6, %v45_v17  }
  0x84   :  { %v52_v24 = vpop.permute.xlu0 %51   ;;  %v59_v26 = vpop.permute.xlu1 %58  }
  0x85   :  { %54 = vst.msk [vmem:[#allocation0] ss:$8 sm:$0x3] %vm53_vm7, %v52_v24  }
  0x86   :  { %61 = vst.msk [vmem:[#allocation0] ss:$8 sm:$0x3] %vm60_vm8, %v59_v26  }
  0x87   :  { %68 = vst.msk [vmem:[#allocation0] ss:$8 sm:$0x3] %vm67_vm9, %v66_v19  }
  0x8c   :  { %v73_v27 = vpop.permute.xlu0 %72   ;;  %v80_v28 = vpop.permute.xlu1 %79  }
  0x8d   :  { %75 = vst.msk [vmem:[#allocation0] ss:$8 sm:$0x3] %vm74_vm10, %v73_v27  }
  0x8e   :  { %82 = vst.msk [vmem:[#allocation0] ss:$8 sm:$0x3] %vm81_vm11, %v80_v28  }
  0x8f   :  { %89 = vst.msk [vmem:[#allocation0] ss:$8 sm:$0x3] %vm88_vm12, %v87_v22  }
  0x94   :  { %v94_v29 = vpop.permute.xlu0 %93   ;;  %v101_v30 = vpop.permute.xlu1 %100  }
  0x95   :  { %96 = vst.msk [vmem:[#allocation0] ss:$8 sm:$0x3] %vm95_vm13, %v94_v29  }
  0x96   :  { %103 = vst.msk [vmem:[#allocation0] ss:$8 sm:$0x3] %vm102_vm14, %v101_v30  }
  0x97   :  { %110 = vst.msk [vmem:[#allocation0] ss:$8 sm:$0x3] %vm109_vm15, %v108_v25  }
  0x9e   :  { %v113_v31 = vld [vmem:[#allocation0] sm:$0x1]  ;;  %v118_v32 = vld [vmem:[#allocation0 + $0x8] sm:$0x1] }
  0x9f   :  { %116 = vst [vmem:[%s234_s1] sm:$0x1] %v113_v31 }
  0xa0   :  { %138 = vst [vmem:[%s234_s1 + $0x1] sm:$0x1] %v118_v32 }

// kernel: up_forward.4
= control target key start
LH: loop header
LB: loop body
LE: loop exit
PB: predicated region body
PF: predicated region fallthrough
CT: control target
= control target key end

     0   :  { %s341_s12 = smov 0   ;;  %s413_s0 = inlined_call_operand.vmem [shape: f32[2,8,64], index: 0, kind: input, shape index: {}]   ;;  %s414_s1 = inlined_call_operand.vmem [shape: f32[64,256], index: 1, kind: input, shape index: {}]   ;;  %s415_s2 = inlined_call_operand.vmem [shape: f32[1,256], index: 2, kind: input, shape index: {}]   ;;  %s416_s3 = inlined_call_operand.vmem [shape: f32[2,8,256], index: 3, kind: output, shape index: {}]  }
   0x1 LB: > { %s292_s13 = sadd.s32 4294967295, %s319_s12   ;;  %p296_p0 = scmp.ge.s32.totalorder %s319_s12, 1  ;;  %s319_s12 = sphi %s341_s12, %s13_s12  }
   0x2   : > { %p136_p1 = scmp.lt.s32.totalorder %s319_s12, 3 }
   0x4   : > { %p137_p2 = pnand %p296_p0, %p136_p1 }
   0x5   : > { %p159_p3 = scmp.lt.s32.totalorder (!%p137_p2), %s292_s13, 1 }
   0x6   : > { %140 = sbr.rel (%p137_p2) target bundleno = 157 (0x9d), region = 32 }
   0xb   : > { %v183_v0 = vld [vmem:[%s414_s1 + $0x70] sm:$0xff]  ;;  %v184_v1 = vld [vmem:[%s414_s1 + $0x78] sm:$0xff]  ;;  %v181_v2 = vld [vmem:[%s414_s1 + $0x60] sm:$0xff]  ;;  %s418_s13 = smov (!%p159_p3, %s292_s13), 1  ;;  %vm191_vm0 = vcmask 523264  }
   0xc   : > { %203 = vmatpush.msra.mxu0 %v183_v0  ;;  %223 = vmatpush.msra.mxu1 %v184_v1  ;;  %v182_v3 = vld [vmem:[%s414_s1 + $0x68] sm:$0xff]  ;;  %v179_v4 = vld [vmem:[%s414_s1 + $0x50] sm:$0xff]  ;;  %v180_v5 = vld [vmem:[%s414_s1 + $0x58] sm:$0xff]  ;;  %s297_s7 = sshll.u32 %s418_s13, 3  ;;  %s304_s27 = sshll.u32 %s418_s13, 4 }
   0xd   : > { %v177_v6 = vld [vmem:[%s414_s1 + $0x40] sm:$0xff]  ;;  %v178_v7 = vld [vmem:[%s414_s1 + $0x48] sm:$0xff]  ;;  %v175_v8 = vld [vmem:[%s414_s1 + $0x30] sm:$0xff]  ;;  %s162_s20 = scalar_lea.vmem %s413_s0, %s297_s7  ;;  %s167_s30 = scalar_lea.vmem %s416_s3, %s304_s27 }
   0xe   : > { %204 = vmatpush.msra.mxu0 %v181_v2  ;;  %224 = vmatpush.msra.mxu1 %v182_v3  ;;  %v176_v9 = vld [vmem:[%s414_s1 + $0x38] sm:$0xff]  ;;  %v173_v10 = vld [vmem:[%s414_s1 + $0x20] sm:$0xff]  ;;  %v174_v11 = vld [vmem:[%s414_s1 + $0x28] sm:$0xff] }
   0xf   : > { %v171_v12 = vld [vmem:[%s414_s1 + $0x10] sm:$0xff]  ;;  %v172_v13 = vld [vmem:[%s414_s1 + $0x18] sm:$0xff]  ;;  %v169_v14 = vld [vmem:[%s414_s1] sm:$0xff] }
  0x10   : > { %205 = vmatpush.msra.mxu0 %v179_v4  ;;  %225 = vmatpush.msra.mxu1 %v180_v5  ;;  %v170_v15 = vld [vmem:[%s414_s1 + $0x8] sm:$0xff]  ;;  %v168_v16 = vld [vmem:[%s162_s20] sm:$0xff] }
  0x11   : > { %v185_v17 = vld [vmem:[%s415_s2] sm:$0x3] }
  0x12   : > { %206 = vmatpush.msra.mxu0 %v177_v6  ;;  %226 = vmatpush.msra.mxu1 %v178_v7  ;;  %v187_v18 = vperm.slane %v185_v17, 0  ;;  %v188_v19 = vperm.slane %v185_v17, 1 }
  0x14   : > { %207 = vmatpush.msra.mxu0 %v175_v8  ;;  %227 = vmatpush.msra.mxu1 %v176_v9 }
  0x16   : > { %208 = vmatpush.msra.mxu0 %v173_v10  ;;  %228 = vmatpush.msra.mxu1 %v174_v11 }
  0x18   : > { %209 = vmatpush.msra.mxu0 %v171_v12  ;;  %229 = vmatpush.msra.mxu1 %v172_v13 }
  0x1a   : > { %210 = vmatpush.msra.mxu0 %v169_v14  ;;  %230 = vmatpush.msra.mxu1 %v170_v15 }
  0x1b   : > { %300 = vmatmul.msk.f32.vlgmr.msra.gmra.mxu0 %vm191_vm0, %v168_v16  ;;  %301 = vmatmul.msk.f32.vlgmr.msra.gmra.mxu1 %vm191_vm0, %v168_v16 }
  0x98   : > { %v212_v20 = vpop.f32.mrf.mxu0  ;;  %v232_v21 = vpop.f32.mrf.mxu1 }
  0x99   : > { %v213_v22 = vadd.f32 %v212_v20, %v187_v18  ;;  %v233_v23 = vadd.f32 %v232_v21, %v188_v19 }
  0x9b   : > { %235 = vst [vmem:[%s167_s30] sm:$0xff] %v213_v22 }
  0x9c   : > { %236 = vst [vmem:[%s167_s30 + $0x8] sm:$0xff] %v233_v23 }
  0x9d PF: > { %s13_s12 = sadd.s32 1, %s319_s12  }
  0x9e   : > { %p10_p4 = scmp.ge.s32.totalorder %s13_s12, 4  }
  0xa0   :  { %12 = sbr.rel (!%p10_p4) target bundleno = 1 (0x1), region = 62 }

// kernel: tile.33
= control target key start
LH: loop header
LB: loop body
LE: loop exit
PB: predicated region body
PF: predicated region fallthrough
CT: control target
= control target key end

     0   :  { %s28_s0 = inlined_call_operand.vmem [shape: f32[16], index: 0, kind: input, shape index: {}]   ;;  %s29_s1 = inlined_call_operand.vmem [shape: f32[16,16], index: 1, kind: output, shape index: {}]  }
   0x1   :  { %v4_v0 = vld [vmem:[%s28_s0] ss:$0 sm:$0xff] }
   0x2   :  { %5 = vst [vmem:[%s29_s1] sm:$0xff] %v4_v0 }
   0x3   :  { %8 = vst [vmem:[%s29_s1 + $0x8] sm:$0xff] %v4_v0 }

// kernel: tile.34
= control target key start
LH: loop header
LB: loop body
LE: loop exit
PB: predicated region body
PF: predicated region fallthrough
CT: control target
= control target key end

     0   :  { %s7_s6 = smov 3  ;;  %s21_s9 = smov 3  ;;  %vm4_vm0 = vcmask 130048   ;;  %vm11_vm1 = vcmask 1048448   ;;  %vm18_vm2 = vcmask 917248   ;;  %vm25_vm3 = vcmask 786048   ;;  %s129_s0 = inlined_call_operand.vmem [shape: f32[16,16], index: 0, kind: input, shape index: {}]   ;;  %s130_s1 = inlined_call_operand.vmem [shape: f32[1,256], index: 1, kind: output, shape index: {}]  }
   0x1   :  { %v67_v0 = vld [vmem:[%s129_s0 + $0x7] ss:$8 sm:%s7_s6]   ;;  %s82_s10 = smov 112   ;;  %v69_v1 = vld [vmem:[%s129_s0 + $0x5] ss:$8 sm:%s21_s9]   ;;  %s83_s13 = smov 80  }
   0x2   :  { %9 = vrot.lane.b32.xlu0 %v67_v0, %s82_s10  ;;  %23 = vrot.lane.b32.xlu1 %v69_v1, %s83_s13  ;;  %s14_s14 = smov 3  ;;  %s28_s15 = smov 3  ;;  %vm32_vm4 = vcmask 654848   ;;  %vm39_vm5 = vcmask 523648   ;;  %vm46_vm6 = vcmask 392448   ;;  %vm53_vm7 = vcmask 261248  }
   0x3   :  { %s35_s16 = smov 3  ;;  %v68_v3 = vld [vmem:[%s129_s0 + $0x6] ss:$8 sm:%s14_s14]   ;;  %s84_s21 = smov 48   ;;  %v70_v4 = vld [vmem:[%s129_s0 + $0x4] ss:$8 sm:%s28_s15]  }
   0x4   :  { %v71_v2 = vld [vmem:[%s129_s0 + $0x3] ss:$8 sm:%s35_s16]   ;;  %s42_s24 = smov 3  ;;  %s85_s25 = smov 96  }
   0x5   :  { %37 = vrot.lane.b32.xlu2 %v71_v2, %s84_s21  ;;  %s86_s26 = smov 64   ;;  %s49_s27 = smov 3  ;;  %v72_v5 = vld [vmem:[%s129_s0 + $0x2] ss:$8 sm:%s42_s24]  }
   0x6   :  { %v73_v6 = vld [vmem:[%s129_s0 + $0x1] ss:$8 sm:%s49_s27]   ;;  %s87_s3 = smov 32   ;;  %s88_s4 = smov 16  }
   0x7   :  { %s2_s5 = smov 3 }
   0x8   :  { %v3_v7 = vld [vmem:[%s129_s0] ss:$8 sm:%s2_s5]  }
   0x9   :  { %5 = vst.msk [vmem:[#allocation0] ss:$8 sm:$0x3] %vm4_vm0, %v3_v7  }
   0xa   :  { %16 = vrot.lane.b32.xlu0 %v68_v3, %s85_s25  ;;  %30 = vrot.lane.b32.xlu1 %v70_v4, %s86_s26 }
   0xd   :  { %44 = vrot.lane.b32.xlu2 %v72_v5, %s87_s3 }
  0x12   :  { %51 = vrot.lane.b32.xlu0 %v73_v6, %s88_s4 }
  0x5f   :  { %v38_v8 = vpop.permute.xlu2 %37  }
  0x67   :  { %v45_v9 = vpop.permute.xlu2 %44  }
  0x74   :  { %v10_v10 = vpop.permute.xlu0 %9   ;;  %v24_v11 = vpop.permute.xlu1 %23  }
  0x75   :  { %12 = vst.msk [vmem:[#allocation0] ss:$8 sm:$0x3] %vm11_vm1, %v10_v10  }
  0x7c   :  { %v17_v12 = vpop.permute.xlu0 %16   ;;  %v31_v13 = vpop.permute.xlu1 %30  }
  0x7d   :  { %19 = vst.msk [vmem:[#allocation0] ss:$8 sm:$0x3] %vm18_vm2, %v17_v12  }
  0x7e   :  { %26 = vst.msk [vmem:[#allocation0] ss:$8 sm:$0x3] %vm25_vm3, %v24_v11  }
  0x7f   :  { %33 = vst.msk [vmem:[#allocation0] ss:$8 sm:$0x3] %vm32_vm4, %v31_v13  }
  0x80   :  { %40 = vst.msk [vmem:[#allocation0] ss:$8 sm:$0x3] %vm39_vm5, %v38_v8  }
  0x81   :  { %47 = vst.msk [vmem:[#allocation0] ss:$8 sm:$0x3] %vm46_vm6, %v45_v9  }
  0x84   :  { %v52_v14 = vpop.permute.xlu0 %51  }
  0x85   :  { %54 = vst.msk [vmem:[#allocation0] ss:$8 sm:$0x3] %vm53_vm7, %v52_v14  }
  0x8c   :  { %v57_v15 = vld [vmem:[#allocation0] sm:$0x1]  ;;  %v62_v16 = vld [vmem:[#allocation0 + $0x8] sm:$0x1] }
  0x8d   :  { %60 = vst [vmem:[%s130_s1] sm:$0x1] %v57_v15 }
  0x8e   :  { %74 = vst [vmem:[%s130_s1 + $0x1] sm:$0x1] %v62_v16 }

// kernel: up_forward.5
= control target key start
LH: loop header
LB: loop body
LE: loop exit
PB: predicated region body
PF: predicated region fallthrough
CT: control target
= control target key end

     0   :  { %s1134_s15 = smov 0   ;;  %s1778_s0 = inlined_call_operand.vmem [shape: f32[2,16,128], index: 0, kind: input, shape index: {}]   ;;  %s1779_s1 = inlined_call_operand.vmem [shape: f32[2,16,128], index: 1, kind: input, shape index: {}]   ;;  %s1780_s2 = inlined_call_operand.vmem [shape: f32[3,256,256], index: 2, kind: input, shape index: {}]   ;;  %s1781_s3 = inlined_call_operand.vmem [shape: f32[2,16,256], index: 3, kind: output, shape index: {0}]   ;;  %s1782_s4 = inlined_call_operand.vmem [shape: f32[2,2,256], index: 4, kind: output, shape index: {1}]  }
   0x1 LB: > { %s943_s16 = sadd.s32 4294967295, %s1106_s15   ;;  %p947_p0 = scmp.ge.s32.totalorder %s1106_s15, 1  ;;  %s1106_s15 = sphi %s1134_s15, %s15_s15  }
   0x2   : > { %p175_p1 = scmp.lt.s32.totalorder %s1106_s15, 3 }
   0x4   : > { %p176_p2 = pnand %p947_p0, %p175_p1 }
   0x5   : > { %p1270_p3 = scmp.lt.s32.totalorder (!%p176_p2), %s943_s16, 1 }
   0x6   : > { %179 = sbr.rel (%p176_p2) target bundleno = 281 (0x119), region = 32 }
   0xb   : > { %v986_v0 = vld [vmem:[%s1780_s2 + $0x2f0] sm:$0xff]  ;;  %v987_v2 = vld [vmem:[%s1780_s2 + $0x2f8] sm:$0xff]  ;;  %v984_v4 = vld [vmem:[%s1780_s2 + $0x2e0] sm:$0xff]  ;;  %v1108_v18 = vmov 0.0   ;;  %s1785_s16 = smov (!%p1270_p3, %s943_s16), 1  ;;  %vm243_vm0 = vcmask 1040384  }
   0xc   : > { %v1018_v1 = vld [vmem:[%s1780_s2 + $0x3f0] sm:$0xff]  ;;  %422 = vmatpush.msra.mxu0 %v986_v0  ;;  %v1019_v3 = vld [vmem:[%s1780_s2 + $0x3f8] sm:$0xff]  ;;  %v1016_v5 = vld [vmem:[%s1780_s2 + $0x3e0] sm:$0xff]  ;;  %468 = vmatpush.msra.mxu2 %v987_v2  ;;  %235 = vst [vmem:[#allocation2 + $0x28] sm:$0xff] %v1108_v18  ;;  %s1087_s12 = sshll.u32 %s1785_s16, 4  ;;  %vm407_vm1 = vcmask 1046528  }
   0xd   : > { %445 = vmatpush.msra.mxu1 %v1018_v1  ;;  %491 = vmatpush.msra.mxu3 %v1019_v3  ;;  %v985_v6 = vld [vmem:[%s1780_s2 + $0x2e8] sm:$0xff]  ;;  %v982_v8 = vld [vmem:[%s1780_s2 + $0x2d0] sm:$0xff]  ;;  %v983_v10 = vld [vmem:[%s1780_s2 + $0x2d8] sm:$0xff]  ;;  %236 = vst [vmem:[#allocation2 + $0x10] sm:$0xff] %v1108_v18  ;;  %s215_s29 = scalar_lea.vmem %s1778_s0, %s1087_s12  ;;  %s220_s19 = scalar_lea.vmem %s1779_s1, %s1087_s12  ;;  %vm679_vm2 = vcmask 1045504  }
   0xe   : > { %v1017_v7 = vld [vmem:[%s1780_s2 + $0x3e8] sm:$0xff]  ;;  %423 = vmatpush.msra.mxu0 %v984_v4  ;;  %v1014_v9 = vld [vmem:[%s1780_s2 + $0x3d0] sm:$0xff]  ;;  %v1015_v11 = vld [vmem:[%s1780_s2 + $0x3d8] sm:$0xff]  ;;  %469 = vmatpush.msra.mxu2 %v985_v6  ;;  %239 = vst [vmem:[#allocation2 + $0x18] sm:$0x3] %v1108_v18  ;;  %s1089_s12 = sshll.u32 %s1785_s16, 5 }
   0xf   : > { %446 = vmatpush.msra.mxu1 %v1016_v5  ;;  %492 = vmatpush.msra.mxu3 %v1017_v7  ;;  %v980_v12 = vld [vmem:[%s1780_s2 + $0x2c0] sm:$0xff]  ;;  %v981_v14 = vld [vmem:[%s1780_s2 + $0x2c8] sm:$0xff]  ;;  %v978_v16 = vld [vmem:[%s1780_s2 + $0x2b0] sm:$0xff]  ;;  %240 = vst [vmem:[#allocation2 + $0x20] sm:$0x3] %v1108_v18  ;;  %s1763_s28 = scalar_lea.vmem %s1781_s3, %s1089_s12 }
  0x10   : > { %v1012_v13 = vld [vmem:[%s1780_s2 + $0x3c0] sm:$0xff]  ;;  %424 = vmatpush.msra.mxu0 %v982_v8  ;;  %v1013_v15 = vld [vmem:[%s1780_s2 + $0x3c8] sm:$0xff]  ;;  %470 = vmatpush.msra.mxu2 %v983_v10  ;;  %v1010_v17 = vld [vmem:[%s1780_s2 + $0x3b0] sm:$0xff] }
  0x11   : > { %447 = vmatpush.msra.mxu1 %v1014_v9  ;;  %493 = vmatpush.msra.mxu3 %v1015_v11  ;;  %v979_v19 = vld [vmem:[%s1780_s2 + $0x2b8] sm:$0xff]  ;;  %v976_v21 = vld [vmem:[%s1780_s2 + $0x2a0] sm:$0xff]  ;;  %v977_v23 = vld [vmem:[%s1780_s2 + $0x2a8] sm:$0xff] }
  0x12   : > { %425 = vmatpush.msra.mxu0 %v980_v12  ;;  %v1011_v20 = vld [vmem:[%s1780_s2 + $0x3b8] sm:$0xff]  ;;  %471 = vmatpush.msra.mxu2 %v981_v14  ;;  %v1008_v22 = vld [vmem:[%s1780_s2 + $0x3a0] sm:$0xff]  ;;  %v1009_v24 = vld [vmem:[%s1780_s2 + $0x3a8] sm:$0xff] }
  0x13   : > { %448 = vmatpush.msra.mxu1 %v1012_v13  ;;  %494 = vmatpush.msra.mxu3 %v1013_v15  ;;  %v974_v25 = vld [vmem:[%s1780_s2 + $0x290] sm:$0xff]  ;;  %v975_v27 = vld [vmem:[%s1780_s2 + $0x298] sm:$0xff]  ;;  %v972_v29 = vld [vmem:[%s1780_s2 + $0x280] sm:$0xff] }
  0x14   : > { %426 = vmatpush.msra.mxu0 %v978_v16  ;;  %472 = vmatpush.msra.mxu2 %v979_v19  ;;  %v1006_v26 = vld [vmem:[%s1780_s2 + $0x390] sm:$0xff]  ;;  %v1007_v28 = vld [vmem:[%s1780_s2 + $0x398] sm:$0xff]  ;;  %v1004_v30 = vld [vmem:[%s1780_s2 + $0x380] sm:$0xff] }
  0x15   : > { %449 = vmatpush.msra.mxu1 %v1010_v17  ;;  %495 = vmatpush.msra.mxu3 %v1011_v20  ;;  %v973_v31 = vld [vmem:[%s1780_s2 + $0x288] sm:$0xff]  ;;  %v970_v33 = vld [vmem:[%s1780_s2 + $0x270] sm:$0xff]  ;;  %v971_v35 = vld [vmem:[%s1780_s2 + $0x278] sm:$0xff] }
  0x16   : > { %427 = vmatpush.msra.mxu0 %v976_v21  ;;  %473 = vmatpush.msra.mxu2 %v977_v23  ;;  %v1005_v32 = vld [vmem:[%s1780_s2 + $0x388] sm:$0xff]  ;;  %v1002_v34 = vld [vmem:[%s1780_s2 + $0x370] sm:$0xff]  ;;  %v1003_v36 = vld [vmem:[%s1780_s2 + $0x378] sm:$0xff] }
  0x17   : > { %450 = vmatpush.msra.mxu1 %v1008_v22  ;;  %496 = vmatpush.msra.mxu3 %v1009_v24  ;;  %v968_v37 = vld [vmem:[%s1780_s2 + $0x260] sm:$0xff]  ;;  %v969_v39 = vld [vmem:[%s1780_s2 + $0x268] sm:$0xff]  ;;  %v966_v41 = vld [vmem:[%s1780_s2 + $0x250] sm:$0xff] }
  0x18   : > { %428 = vmatpush.msra.mxu0 %v974_v25  ;;  %474 = vmatpush.msra.mxu2 %v975_v27  ;;  %v1000_v38 = vld [vmem:[%s1780_s2 + $0x360] sm:$0xff]  ;;  %v1001_v40 = vld [vmem:[%s1780_s2 + $0x368] sm:$0xff]  ;;  %v998_v42 = vld [vmem:[%s1780_s2 + $0x350] sm:$0xff] }
  0x19   : > { %451 = vmatpush.msra.mxu1 %v1006_v26  ;;  %497 = vmatpush.msra.mxu3 %v1007_v28  ;;  %v967_v43 = vld [vmem:[%s1780_s2 + $0x258] sm:$0xff]  ;;  %v964_v45 = vld [vmem:[%s1780_s2 + $0x240] sm:$0xff]  ;;  %v965_v47 = vld [vmem:[%s1780_s2 + $0x248] sm:$0xff] }
  0x1a   : > { %429 = vmatpush.msra.mxu0 %v972_v29  ;;  %475 = vmatpush.msra.mxu2 %v973_v31  ;;  %v999_v44 = vld [vmem:[%s1780_s2 + $0x358] sm:$0xff]  ;;  %v996_v46 = vld [vmem:[%s1780_s2 + $0x340] sm:$0xff]  ;;  %v997_v48 = vld [vmem:[%s1780_s2 + $0x348] sm:$0xff] }
  0x1b   : > { %452 = vmatpush.msra.mxu1 %v1004_v30  ;;  %498 = vmatpush.msra.mxu3 %v1005_v32  ;;  %v962_v49 = vld [vmem:[%s1780_s2 + $0x230] sm:$0xff]  ;;  %v963_v51 = vld [vmem:[%s1780_s2 + $0x238] sm:$0xff]  ;;  %v960_v53 = vld [vmem:[%s1780_s2 + $0x220] sm:$0xff] }
  0x1c   : > { %430 = vmatpush.msra.mxu0 %v970_v33  ;;  %476 = vmatpush.msra.mxu2 %v971_v35  ;;  %v994_v50 = vld [vmem:[%s1780_s2 + $0x330] sm:$0xff]  ;;  %v995_v52 = vld [vmem:[%s1780_s2 + $0x338] sm:$0xff]  ;;  %v992_v54 = vld [vmem:[%s1780_s2 + $0x320] sm:$0xff] }
  0x1d   : > { %453 = vmatpush.msra.mxu1 %v1002_v34  ;;  %499 = vmatpush.msra.mxu3 %v1003_v36  ;;  %v961_v55 = vld [vmem:[%s1780_s2 + $0x228] sm:$0xff]  ;;  %v958_v57 = vld [vmem:[%s1780_s2 + $0x210] sm:$0xff]  ;;  %v959_v59 = vld [vmem:[%s1780_s2 + $0x218] sm:$0xff] }
  0x1e   : > { %431 = vmatpush.msra.mxu0 %v968_v37  ;;  %477 = vmatpush.msra.mxu2 %v969_v39  ;;  %v993_v56 = vld [vmem:[%s1780_s2 + $0x328] sm:$0xff]  ;;  %v990_v58 = vld [vmem:[%s1780_s2 + $0x310] sm:$0xff]  ;;  %v991_v60 = vld [vmem:[%s1780_s2 + $0x318] sm:$0xff] }
  0x1f   : > { %454 = vmatpush.msra.mxu1 %v1000_v38  ;;  %500 = vmatpush.msra.mxu3 %v1001_v40  ;;  %v956_v61 = vld [vmem:[%s1780_s2 + $0x200] sm:$0xff]  ;;  %v957_v63 = vld [vmem:[%s1780_s2 + $0x208] sm:$0xff]  ;;  %v298_v1 = vld [vmem:[%s1780_s2 + $0xf0] sm:$0xff] }
  0x20   : > { %432 = vmatpush.msra.mxu0 %v966_v41  ;;  %478 = vmatpush.msra.mxu2 %v967_v43  ;;  %v988_v62 = vld [vmem:[%s1780_s2 + $0x300] sm:$0xff]  ;;  %v989_v0 = vld [vmem:[%s1780_s2 + $0x308] sm:$0xff]  ;;  %v330_v2 = vld [vmem:[%s1780_s2 + $0x1f0] sm:$0xff] }
  0x21   : > { %455 = vmatpush.msra.mxu1 %v998_v42  ;;  %501 = vmatpush.msra.mxu3 %v999_v44  ;;  %v299_v3 = vld [vmem:[%s1780_s2 + $0xf8] sm:$0xff]  ;;  %v296_v5 = vld [vmem:[%s1780_s2 + $0xe0] sm:$0xff]  ;;  %v232_v8 = vld [vmem:[%s215_s29 + $0x8] sm:$0xff] }
  0x22   : > { %433 = vmatpush.msra.mxu0 %v964_v45  ;;  %479 = vmatpush.msra.mxu2 %v965_v47  ;;  %v331_v4 = vld [vmem:[%s1780_s2 + $0x1f8] sm:$0xff]  ;;  %v328_v6 = vld [vmem:[%s1780_s2 + $0x1e0] sm:$0xff]  ;;  %v297_v9 = vld [vmem:[%s1780_s2 + $0xe8] sm:$0xff]  ;;  %v245_v13 = vrot.slane %v232_v8, 7 }
  0x23   : > { %456 = vmatpush.msra.mxu1 %v996_v46  ;;  %502 = vmatpush.msra.mxu3 %v997_v48  ;;  %v231_v7 = vld [vmem:[%s215_s29] sm:$0xff]  ;;  %v329_v10 = vld [vmem:[%s1780_s2 + $0x1e8] sm:$0xff]  ;;  %v294_v11 = vld [vmem:[%s1780_s2 + $0xd0] sm:$0xff]  ;;  %s1090_s29 = sshll.u32 %s1785_s16, 2 }
  0x24   : > { %434 = vmatpush.msra.mxu0 %v962_v49  ;;  %480 = vmatpush.msra.mxu2 %v963_v51  ;;  %v244_v12 = vrot.slane %v231_v7, 7  ;;  %v326_v14 = vld [vmem:[%s1780_s2 + $0x1d0] sm:$0xff]  ;;  %v233_v15 = vld [vmem:[%s220_s19] sm:$0xff]  ;;  %v234_v16 = vld [vmem:[%s220_s19 + $0x8] sm:$0xff]  ;;  %252 = vst [vmem:[#allocation2 + $0x18] sm:$0x1] %v245_v13  ;;  %s230_s6 = scalar_lea.vmem %s1782_s4, %s1090_s29 }
  0x25   : > { %457 = vmatpush.msra.mxu1 %v994_v50  ;;  %503 = vmatpush.msra.mxu3 %v995_v52  ;;  %v295_v17 = vld [vmem:[%s1780_s2 + $0xd8] sm:$0xff]  ;;  %v255_v20 = vrot.slane %v233_v15, 7  ;;  %v256_v21 = vrot.slane %v234_v16, 7  ;;  %v292_v22 = vld [vmem:[%s1780_s2 + $0xc0] sm:$0xff]  ;;  %v293_v24 = vld [vmem:[%s1780_s2 + $0xc8] sm:$0xff] }
  0x26   : > { %435 = vmatpush.msra.mxu0 %v960_v53  ;;  %481 = vmatpush.msra.mxu2 %v961_v55  ;;  %v327_v18 = vld [vmem:[%s1780_s2 + $0x1d8] sm:$0xff]  ;;  %v1390_v19 = vsel %vm243_vm0, %v244_v12, %v245_v13  ;;  %250 = vst [vmem:[#allocation2 + $0x28] sm:$0xfe] %v244_v12  ;;  %v324_v23 = vld [vmem:[%s1780_s2 + $0x1c0] sm:$0xff]  ;;  %v325_v25 = vld [vmem:[%s1780_s2 + $0x1c8] sm:$0xff] }
  0x27   : > { %458 = vmatpush.msra.mxu1 %v992_v54  ;;  %504 = vmatpush.msra.mxu3 %v993_v56  ;;  %v290_v26 = vld [vmem:[%s1780_s2 + $0xb0] sm:$0xff]  ;;  %v1411_v28 = vsel %vm243_vm0, %v255_v20, %v256_v21  ;;  %261 = vst [vmem:[#allocation2 + $0x10] sm:$0xfe] %v255_v20  ;;  %v291_v29 = vld [vmem:[%s1780_s2 + $0xb8] sm:$0xff]  ;;  %v288_v31 = vld [vmem:[%s1780_s2 + $0xa0] sm:$0xff]  ;;  %v409_v38 = vrot.slane %v1390_v19, 1 }
  0x28   : > { %436 = vmatpush.msra.mxu0 %v958_v57  ;;  %482 = vmatpush.msra.mxu2 %v959_v59  ;;  %v322_v27 = vld [vmem:[%s1780_s2 + $0x1b0] sm:$0xff]  ;;  %v323_v30 = vld [vmem:[%s1780_s2 + $0x1b8] sm:$0xff]  ;;  %v320_v32 = vld [vmem:[%s1780_s2 + $0x1a0] sm:$0xff]  ;;  %263 = vst [vmem:[#allocation2 + $0x20] sm:$0x1] %v256_v21  ;;  %v412_v47 = vrot.slane %v1411_v28, 1 }
  0x29   : > { %459 = vmatpush.msra.mxu1 %v990_v58  ;;  %505 = vmatpush.msra.mxu3 %v991_v60  ;;  %v289_v33 = vld [vmem:[%s1780_s2 + $0xa8] sm:$0xff]  ;;  %v286_v35 = vld [vmem:[%s1780_s2 + $0x90] sm:$0xff]  ;;  %v287_v39 = vld [vmem:[%s1780_s2 + $0x98] sm:$0xff] }
  0x2a   : > { %437 = vmatpush.msra.mxu0 %v956_v61  ;;  %483 = vmatpush.msra.mxu2 %v957_v63  ;;  %v321_v34 = vld [vmem:[%s1780_s2 + $0x1a8] sm:$0xff]  ;;  %v318_v36 = vld [vmem:[%s1780_s2 + $0x190] sm:$0xff]  ;;  %v319_v40 = vld [vmem:[%s1780_s2 + $0x198] sm:$0xff] }
  0x2b   : > { %460 = vmatpush.msra.mxu1 %v988_v62  ;;  %506 = vmatpush.msra.mxu3 %v989_v0  ;;  %v284_v42 = vld [vmem:[%s1780_s2 + $0x80] sm:$0xff]  ;;  %v285_v44 = vld [vmem:[%s1780_s2 + $0x88] sm:$0xff]  ;;  %v282_v49 = vld [vmem:[%s1780_s2 + $0x70] sm:$0xff] }
  0x2c   : > { %514 = vmatpush.msrb.mxu0 %v298_v1  ;;  %560 = vmatpush.msrb.mxu2 %v299_v3  ;;  %v316_v43 = vld [vmem:[%s1780_s2 + $0x180] sm:$0xff]  ;;  %v317_v45 = vld [vmem:[%s1780_s2 + $0x188] sm:$0xff]  ;;  %v314_v51 = vld [vmem:[%s1780_s2 + $0x170] sm:$0xff] }
  0x2d   : > { %537 = vmatpush.msrb.mxu1 %v330_v2  ;;  %583 = vmatpush.msrb.mxu3 %v331_v4  ;;  %v332_v37 = vld [vmem:[#allocation2 + $0x28] sm:$0xfe]  ;;  %v283_v52 = vld [vmem:[%s1780_s2 + $0x78] sm:$0xff]  ;;  %v280_v54 = vld [vmem:[%s1780_s2 + $0x60] sm:$0xff] }
  0x2e   : > { %515 = vmatpush.msrb.mxu0 %v296_v5  ;;  %561 = vmatpush.msrb.mxu2 %v297_v9  ;;  %v408_v41 = vrot.slane %v332_v37, 1  ;;  %v333_v46 = vld [vmem:[#allocation2 + $0x10] sm:$0xfe]  ;;  %v315_v53 = vld [vmem:[%s1780_s2 + $0x178] sm:$0xff]  ;;  %v312_v57 = vld [vmem:[%s1780_s2 + $0x160] sm:$0xff] }
  0x2f   : > { %538 = vmatpush.msrb.mxu1 %v328_v6  ;;  %584 = vmatpush.msrb.mxu3 %v329_v10  ;;  %v411_v50 = vrot.slane %v333_v46, 1  ;;  %v334_v55 = vld [vmem:[#allocation2 + $0x18] sm:$0x1]  ;;  %v281_v58 = vld [vmem:[%s1780_s2 + $0x68] sm:$0xff]  ;;  %v278_v60 = vld [vmem:[%s1780_s2 + $0x50] sm:$0xff] }
  0x30   : > { %516 = vmatpush.msrb.mxu0 %v294_v11  ;;  %562 = vmatpush.msrb.mxu2 %v295_v17  ;;  %v410_v48 = vsel %vm407_vm1, %v408_v41, %v409_v38  ;;  %v313_v59 = vld [vmem:[%s1780_s2 + $0x168] sm:$0xff]  ;;  %v310_v61 = vld [vmem:[%s1780_s2 + $0x150] sm:$0xff]  ;;  %v414_v62 = vrot.slane %v334_v55, 1  ;;  %v335_v63 = vld [vmem:[#allocation2 + $0x20] sm:$0x1] }
  0x31   : > { %539 = vmatpush.msrb.mxu1 %v326_v14  ;;  %585 = vmatpush.msrb.mxu3 %v327_v18  ;;  %v413_v56 = vsel %vm407_vm1, %v411_v50, %v412_v47  ;;  %v279_v0 = vld [vmem:[%s1780_s2 + $0x58] sm:$0xff]  ;;  %v276_v2 = vld [vmem:[%s1780_s2 + $0x40] sm:$0xff]  ;;  %v277_v4 = vld [vmem:[%s1780_s2 + $0x48] sm:$0xff]  ;;  %v416_v6 = vrot.slane %v335_v63, 1 }
  0x32   : > { %517 = vmatpush.msrb.mxu0 %v292_v22  ;;  %563 = vmatpush.msrb.mxu2 %v293_v24  ;;  %v311_v1 = vld [vmem:[%s1780_s2 + $0x158] sm:$0xff]  ;;  %v308_v3 = vld [vmem:[%s1780_s2 + $0x140] sm:$0xff]  ;;  %v309_v5 = vld [vmem:[%s1780_s2 + $0x148] sm:$0xff]  ;;  %v415_v7 = vsel %vm407_vm1, %v409_v38, %v414_v62 }
  0x33   : > { %540 = vmatpush.msrb.mxu1 %v324_v23  ;;  %586 = vmatpush.msrb.mxu3 %v325_v25  ;;  %v274_v8 = vld [vmem:[%s1780_s2 + $0x30] sm:$0xff]  ;;  %v275_v10 = vld [vmem:[%s1780_s2 + $0x38] sm:$0xff]  ;;  %v417_v12 = vsel %vm407_vm1, %v412_v47, %v416_v6  ;;  %v272_v13 = vld [vmem:[%s1780_s2 + $0x20] sm:$0xff] }
  0x34   : > { %518 = vmatpush.msrb.mxu0 %v290_v26  ;;  %564 = vmatpush.msrb.mxu2 %v291_v29  ;;  %v306_v9 = vld [vmem:[%s1780_s2 + $0x130] sm:$0xff]  ;;  %v307_v11 = vld [vmem:[%s1780_s2 + $0x138] sm:$0xff]  ;;  %v304_v14 = vld [vmem:[%s1780_s2 + $0x120] sm:$0xff] }
  0x35   : > { %541 = vmatpush.msrb.mxu1 %v322_v27  ;;  %587 = vmatpush.msrb.mxu3 %v323_v30  ;;  %v273_v15 = vld [vmem:[%s1780_s2 + $0x28] sm:$0xff]  ;;  %v270_v17 = vld [vmem:[%s1780_s2 + $0x10] sm:$0xff]  ;;  %v271_v20 = vld [vmem:[%s1780_s2 + $0x18] sm:$0xff] }
  0x36   : > { %519 = vmatpush.msrb.mxu0 %v288_v31  ;;  %565 = vmatpush.msrb.mxu2 %v289_v33  ;;  %v305_v16 = vld [vmem:[%s1780_s2 + $0x128] sm:$0xff]  ;;  %v302_v18 = vld [vmem:[%s1780_s2 + $0x110] sm:$0xff]  ;;  %v303_v21 = vld [vmem:[%s1780_s2 + $0x118] sm:$0xff] }
  0x37   : > { %542 = vmatpush.msrb.mxu1 %v320_v32  ;;  %588 = vmatpush.msrb.mxu3 %v321_v34  ;;  %v268_v22 = vld [vmem:[%s1780_s2] sm:$0xff]  ;;  %v269_v24 = vld [vmem:[%s1780_s2 + $0x8] sm:$0xff]  ;;  %v1050_v26 = vld [vmem:[%s1780_s2 + $0x4f0] sm:$0xff] }
  0x38   : > { %520 = vmatpush.msrb.mxu0 %v286_v35  ;;  %566 = vmatpush.msrb.mxu2 %v287_v39  ;;  %v300_v23 = vld [vmem:[%s1780_s2 + $0x100] sm:$0xff]  ;;  %v301_v25 = vld [vmem:[%s1780_s2 + $0x108] sm:$0xff]  ;;  %v1082_v27 = vld [vmem:[%s1780_s2 + $0x5f0] sm:$0xff] }
  0x39   : > { %543 = vmatpush.msrb.mxu1 %v318_v36  ;;  %589 = vmatpush.msrb.mxu3 %v319_v40  ;;  %v1051_v29 = vld [vmem:[%s1780_s2 + $0x4f8] sm:$0xff]  ;;  %v264_v31 = vld [vmem:[#allocation2 + $0x28] sm:$0xff]  ;;  %v1048_v32 = vld [vmem:[%s1780_s2 + $0x4e0] sm:$0xff] }
  0x3a   : > { %521 = vmatpush.msrb.mxu0 %v284_v42  ;;  %567 = vmatpush.msrb.mxu2 %v285_v44  ;;  %v1083_v30 = vld [vmem:[%s1780_s2 + $0x5f8] sm:$0xff]  ;;  %v1080_v33 = vld [vmem:[%s1780_s2 + $0x5e0] sm:$0xff]  ;;  %v1049_v34 = vld [vmem:[%s1780_s2 + $0x4e8] sm:$0xff] }
  0x3b   : > { %544 = vmatpush.msrb.mxu1 %v316_v43  ;;  %590 = vmatpush.msrb.mxu3 %v317_v45  ;;  %v1081_v35 = vld [vmem:[%s1780_s2 + $0x5e8] sm:$0xff]  ;;  %v265_v36 = vld [vmem:[#allocation2 + $0x10] sm:$0xff]  ;;  %v1047_v39 = vld [vmem:[%s1780_s2 + $0x4d8] sm:$0xff] }
  0x3c   : > { %484 = vmatmul.f32.vlgmr.msra.gmra.mxu2 %v410_v48  ;;  %522 = vmatpush.msrb.mxu0 %v282_v49  ;;  %v1046_v37 = vld [vmem:[%s1780_s2 + $0x4d0] sm:$0xff]  ;;  %v1079_v40 = vld [vmem:[%s1780_s2 + $0x5d8] sm:$0xff]  ;;  %v1044_v41 = vld [vmem:[%s1780_s2 + $0x4c0] sm:$0xff] }
  0x3d   : > { %545 = vmatpush.msrb.mxu1 %v314_v51  ;;  %568 = vmatpush.msrb.mxu2 %v283_v52  ;;  %v1078_v38 = vld [vmem:[%s1780_s2 + $0x5d0] sm:$0xff]  ;;  %v1076_v42 = vld [vmem:[%s1780_s2 + $0x5c0] sm:$0xff]  ;;  %v1045_v43 = vld [vmem:[%s1780_s2 + $0x4c8] sm:$0xff] }
  0x3e   : > { %591 = vmatpush.msrb.mxu3 %v315_v53  ;;  %523 = vmatpush.msrb.mxu0 %v280_v54  ;;  %v1077_v44 = vld [vmem:[%s1780_s2 + $0x5c8] sm:$0xff]  ;;  %v1042_v45 = vld [vmem:[%s1780_s2 + $0x4b0] sm:$0xff]  ;;  %v1043_v47 = vld [vmem:[%s1780_s2 + $0x4b8] sm:$0xff] }
  0x3f   : > { %507 = vmatmul.f32.vlgmr.msra.gmra.mxu3 %v413_v56  ;;  %546 = vmatpush.msrb.mxu1 %v312_v57  ;;  %v1074_v46 = vld [vmem:[%s1780_s2 + $0x5b0] sm:$0xff]  ;;  %v1040_v49 = vld [vmem:[%s1780_s2 + $0x4a0] sm:$0xff]  ;;  %v1041_v51 = vld [vmem:[%s1780_s2 + $0x4a8] sm:$0xff] }
  0x40   : > { %569 = vmatpush.msrb.mxu2 %v281_v58  ;;  %592 = vmatpush.msrb.mxu3 %v313_v59  ;;  %v1072_v50 = vld [vmem:[%s1780_s2 + $0x5a0] sm:$0xff]  ;;  %v1073_v52 = vld [vmem:[%s1780_s2 + $0x5a8] sm:$0xff]  ;;  %v1038_v53 = vld [vmem:[%s1780_s2 + $0x490] sm:$0xff] }
  0x41   : > { %524 = vmatpush.msrb.mxu0 %v278_v60  ;;  %547 = vmatpush.msrb.mxu1 %v310_v61  ;;  %v1070_v54 = vld [vmem:[%s1780_s2 + $0x590] sm:$0xff]  ;;  %v1039_v55 = vld [vmem:[%s1780_s2 + $0x498] sm:$0xff]  ;;  %v1036_v57 = vld [vmem:[%s1780_s2 + $0x480] sm:$0xff] }
  0x42   : > { %570 = vmatpush.msrb.mxu2 %v279_v0  ;;  %593 = vmatpush.msrb.mxu3 %v311_v1  ;;  %v1068_v58 = vld [vmem:[%s1780_s2 + $0x580] sm:$0xff]  ;;  %v1037_v59 = vld [vmem:[%s1780_s2 + $0x488] sm:$0xff]  ;;  %v1034_v61 = vld [vmem:[%s1780_s2 + $0x470] sm:$0xff] }
  0x43   : > { %525 = vmatpush.msrb.mxu0 %v276_v2  ;;  %548 = vmatpush.msrb.mxu1 %v308_v3  ;;  %v1069_v60 = vld [vmem:[%s1780_s2 + $0x588] sm:$0xff]  ;;  %v1066_v62 = vld [vmem:[%s1780_s2 + $0x570] sm:$0xff]  ;;  %v1035_v63 = vld [vmem:[%s1780_s2 + $0x478] sm:$0xff] }
  0x44   : > { %571 = vmatpush.msrb.mxu2 %v277_v4  ;;  %594 = vmatpush.msrb.mxu3 %v309_v5  ;;  %v1067_v0 = vld [vmem:[%s1780_s2 + $0x578] sm:$0xff]  ;;  %v1064_v1 = vld [vmem:[%s1780_s2 + $0x560] sm:$0xff]  ;;  %v1033_v3 = vld [vmem:[%s1780_s2 + $0x468] sm:$0xff] }
  0x45   : > { %438 = vmatmul.f32.vlgmr.msra.gmra.mxu0 %v410_v48  ;;  %487 = vmatmul.f32.gmra.mxu2 %v415_v7  ;;  %v1075_v48 = vld [vmem:[%s1780_s2 + $0x5b8] sm:$0xff]  ;;  %v1032_v2 = vld [vmem:[%s1780_s2 + $0x460] sm:$0xff]  ;;  %v1065_v4 = vld [vmem:[%s1780_s2 + $0x568] sm:$0xff] }
  0x46   : > { %526 = vmatpush.msrb.mxu0 %v274_v8  ;;  %549 = vmatpush.msrb.mxu1 %v306_v9  ;;  %v1030_v5 = vld [vmem:[%s1780_s2 + $0x450] sm:$0xff]  ;;  %v1063_v8 = vld [vmem:[%s1780_s2 + $0x558] sm:$0xff]  ;;  %v1028_v9 = vld [vmem:[%s1780_s2 + $0x440] sm:$0xff] }
  0x47   : > { %572 = vmatpush.msrb.mxu2 %v275_v10  ;;  %595 = vmatpush.msrb.mxu3 %v307_v11  ;;  %v1062_v6 = vld [vmem:[%s1780_s2 + $0x550] sm:$0xff]  ;;  %v1060_v10 = vld [vmem:[%s1780_s2 + $0x540] sm:$0xff]  ;;  %v1029_v11 = vld [vmem:[%s1780_s2 + $0x448] sm:$0xff] }
  0x48   : > { %461 = vmatmul.f32.vlgmr.msra.gmra.mxu1 %v413_v56  ;;  %510 = vmatmul.f32.gmra.mxu3 %v417_v12  ;;  %v1071_v56 = vld [vmem:[%s1780_s2 + $0x598] sm:$0xff] }
  0x49   : > { %527 = vmatpush.msrb.mxu0 %v272_v13  ;;  %550 = vmatpush.msrb.mxu1 %v304_v14  ;;  %v1026_v13 = vld [vmem:[%s1780_s2 + $0x430] sm:$0xff] }
  0x4a   : > { %573 = vmatpush.msrb.mxu2 %v273_v15  ;;  %596 = vmatpush.msrb.mxu3 %v305_v16  ;;  %v1058_v14 = vld [vmem:[%s1780_s2 + $0x530] sm:$0xff]  ;;  %v1027_v15 = vld [vmem:[%s1780_s2 + $0x438] sm:$0xff] }
  0x4b   : > { %528 = vmatpush.msrb.mxu0 %v270_v17  ;;  %551 = vmatpush.msrb.mxu1 %v302_v18  ;;  %v1059_v16 = vld [vmem:[%s1780_s2 + $0x538] sm:$0xff]  ;;  %v606_v17 = vld [vmem:[#allocation2 + $0x28] sm:$0xfc]  ;;  %v607_v18 = vld [vmem:[#allocation2 + $0x10] sm:$0xfc] }
  0x4c   : > { %574 = vmatpush.msrb.mxu2 %v271_v20  ;;  %597 = vmatpush.msrb.mxu3 %v303_v21  ;;  %v1024_v20 = vld [vmem:[%s1780_s2 + $0x420] sm:$0xff] }
  0x4d   : > { %529 = vmatpush.msrb.mxu0 %v268_v22  ;;  %552 = vmatpush.msrb.mxu1 %v300_v23  ;;  %v1056_v21 = vld [vmem:[%s1780_s2 + $0x520] sm:$0xff]  ;;  %v1025_v22 = vld [vmem:[%s1780_s2 + $0x428] sm:$0xff] }
  0x4e   : > { %575 = vmatpush.msrb.mxu2 %v269_v24  ;;  %598 = vmatpush.msrb.mxu3 %v301_v25  ;;  %v1057_v23 = vld [vmem:[%s1780_s2 + $0x528] sm:$0xff]  ;;  %v1022_v24 = vld [vmem:[%s1780_s2 + $0x410] sm:$0xff] }
  0x4f   : > { %694 = vmatpush.msra.mxu0 %v1050_v26  ;;  %717 = vmatpush.msra.mxu1 %v1082_v27  ;;  %v1054_v25 = vld [vmem:[%s1780_s2 + $0x510] sm:$0xff]  ;;  %v680_v26 = vrot.slane %v606_v17, 2  ;;  %v681_v27 = vrot.slane %v1390_v19, 2 }
  0x50   : > { %740 = vmatpush.msra.mxu2 %v1051_v29  ;;  %763 = vmatpush.msra.mxu3 %v1083_v30  ;;  %v683_v29 = vrot.slane %v607_v18, 2  ;;  %v684_v30 = vrot.slane %v1411_v28, 2 }
  0x51   : > { %441 = vmatmul.f32.gmra.mxu0 %v415_v7  ;;  %576 = vmatmul.f32.vlgmr.msrb.gmra.mxu2 %v264_v31  ;;  %v1031_v7 = vld [vmem:[%s1780_s2 + $0x458] sm:$0xff] }
  0x52   : > { %695 = vmatpush.msra.mxu0 %v1048_v32  ;;  %718 = vmatpush.msra.mxu1 %v1080_v33  ;;  %v1055_v32 = vld [vmem:[%s1780_s2 + $0x518] sm:$0xff]  ;;  %v1021_v33 = vld [vmem:[%s1780_s2 + $0x408] sm:$0xff] }
  0x53   : > { %741 = vmatpush.msra.mxu2 %v1049_v34  ;;  %764 = vmatpush.msra.mxu3 %v1081_v35  ;;  %v1053_v34 = vld [vmem:[%s1780_s2 + $0x508] sm:$0xff]  ;;  %v682_v35 = vsel %vm679_vm2, %v680_v26, %v681_v27 }
  0x54   : > { %464 = vmatmul.f32.gmra.mxu1 %v417_v12  ;;  %599 = vmatmul.f32.vlgmr.msrb.gmra.mxu3 %v265_v36  ;;  %v1061_v12 = vld [vmem:[%s1780_s2 + $0x548] sm:$0xff] }
  0x55   : > { %696 = vmatpush.msra.mxu0 %v1046_v37  ;;  %719 = vmatpush.msra.mxu1 %v1078_v38  ;;  %v608_v37 = vld [vmem:[#allocation2 + $0x18] sm:$0x3]  ;;  %v609_v38 = vld [vmem:[#allocation2 + $0x20] sm:$0x3] }
  0x56   : > { %742 = vmatpush.msra.mxu2 %v1047_v39  ;;  %765 = vmatpush.msra.mxu3 %v1079_v40  ;;  %v686_v39 = vrot.slane %v608_v37, 2  ;;  %v688_v40 = vrot.slane %v609_v38, 2 }
  0x57   : > { %697 = vmatpush.msra.mxu0 %v1044_v41  ;;  %720 = vmatpush.msra.mxu1 %v1076_v42 }
  0x58   : > { %743 = vmatpush.msra.mxu2 %v1045_v43  ;;  %766 = vmatpush.msra.mxu3 %v1077_v44  ;;  %v687_v41 = vsel %vm679_vm2, %v681_v27, %v686_v39  ;;  %v689_v42 = vsel %vm679_vm2, %v684_v30, %v688_v40 }
  0x59   : > { %698 = vmatpush.msra.mxu0 %v1042_v45  ;;  %721 = vmatpush.msra.mxu1 %v1074_v46 }
  0x5a   : > { %744 = vmatpush.msra.mxu2 %v1043_v47  ;;  %767 = vmatpush.msra.mxu3 %v1075_v48 }
  0x5b   : > { %530 = vmatmul.f32.vlgmr.msrb.gmra.mxu0 %v264_v31  ;;  %579 = vmatmul.f32.gmra.mxu2 %v1390_v19  ;;  %v1023_v31 = vld [vmem:[%s1780_s2 + $0x418] sm:$0xff] }
  0x5c   : > { %699 = vmatpush.msra.mxu0 %v1040_v49  ;;  %722 = vmatpush.msra.mxu1 %v1072_v50 }
  0x5d   : > { %745 = vmatpush.msra.mxu2 %v1041_v51  ;;  %768 = vmatpush.msra.mxu3 %v1073_v52 }
  0x5e   : > { %553 = vmatmul.f32.vlgmr.msrb.gmra.mxu1 %v265_v36  ;;  %602 = vmatmul.f32.gmra.mxu3 %v1411_v28  ;;  %v685_v36 = vsel %vm679_vm2, %v683_v29, %v684_v30 }
  0x5f   : > { %700 = vmatpush.msra.mxu0 %v1038_v53  ;;  %723 = vmatpush.msra.mxu1 %v1070_v54 }
  0x60   : > { %746 = vmatpush.msra.mxu2 %v1039_v55  ;;  %769 = vmatpush.msra.mxu3 %v1071_v56 }
  0x61   : > { %701 = vmatpush.msra.mxu0 %v1036_v57  ;;  %724 = vmatpush.msra.mxu1 %v1068_v58 }
  0x62   : > { %747 = vmatpush.msra.mxu2 %v1037_v59  ;;  %770 = vmatpush.msra.mxu3 %v1069_v60 }
  0x63   : > { %702 = vmatpush.msra.mxu0 %v1034_v61  ;;  %725 = vmatpush.msra.mxu1 %v1066_v62 }
  0x64   : > { %748 = vmatpush.msra.mxu2 %v1035_v63  ;;  %771 = vmatpush.msra.mxu3 %v1067_v0 }
  0x65   : > { %533 = vmatmul.f32.gmra.mxu0 %v1390_v19  ;;  %726 = vmatpush.msra.mxu1 %v1064_v1  ;;  %v1020_v19 = vld [vmem:[%s1780_s2 + $0x400] sm:$0xff] }
  0x66   : > { %703 = vmatpush.msra.mxu0 %v1032_v2  ;;  %749 = vmatpush.msra.mxu2 %v1033_v3 }
  0x67   : > { %772 = vmatpush.msra.mxu3 %v1065_v4  ;;  %556 = vmatmul.f32.gmra.mxu1 %v1411_v28  ;;  %v1052_v28 = vld [vmem:[%s1780_s2 + $0x500] sm:$0xff] }
  0x68   : > { %704 = vmatpush.msra.mxu0 %v1030_v5  ;;  %727 = vmatpush.msra.mxu1 %v1062_v6 }
  0x69   : > { %750 = vmatpush.msra.mxu2 %v1031_v7  ;;  %773 = vmatpush.msra.mxu3 %v1063_v8 }
  0x6a   : > { %705 = vmatpush.msra.mxu0 %v1028_v9  ;;  %728 = vmatpush.msra.mxu1 %v1060_v10 }
  0x6b   : > { %751 = vmatpush.msra.mxu2 %v1029_v11  ;;  %774 = vmatpush.msra.mxu3 %v1061_v12 }
  0x6c   : > { %706 = vmatpush.msra.mxu0 %v1026_v13  ;;  %729 = vmatpush.msra.mxu1 %v1058_v14 }
  0x6d   : > { %752 = vmatpush.msra.mxu2 %v1027_v15  ;;  %775 = vmatpush.msra.mxu3 %v1059_v16 }
  0x6e   : > { %707 = vmatpush.msra.mxu0 %v1024_v20  ;;  %730 = vmatpush.msra.mxu1 %v1056_v21 }
  0x6f   : > { %753 = vmatpush.msra.mxu2 %v1025_v22  ;;  %776 = vmatpush.msra.mxu3 %v1057_v23 }
  0x70   : > { %708 = vmatpush.msra.mxu0 %v1022_v24  ;;  %731 = vmatpush.msra.mxu1 %v1054_v25 }
  0x71   : > { %754 = vmatpush.msra.mxu2 %v1023_v31  ;;  %777 = vmatpush.msra.mxu3 %v1055_v32 }
  0x72   : > { %709 = vmatpush.msra.mxu0 %v1020_v19  ;;  %732 = vmatpush.msra.mxu1 %v1052_v28 }
  0x73   : > { %755 = vmatpush.msra.mxu2 %v1021_v33  ;;  %778 = vmatpush.msra.mxu3 %v1053_v34 }
  0x74   : > { %710 = vmatmul.f32.vlgmr.msra.gmra.mxu0 %v682_v35  ;;  %733 = vmatmul.f32.vlgmr.msra.gmra.mxu1 %v685_v36 }
  0x75   : > { %756 = vmatmul.f32.vlgmr.msra.gmra.mxu2 %v682_v35  ;;  %779 = vmatmul.f32.vlgmr.msra.gmra.mxu3 %v685_v36 }
  0x7c   : > { %713 = vmatmul.f32.gmra.mxu0 %v687_v41  ;;  %736 = vmatmul.f32.gmra.mxu1 %v689_v42 }
  0x7d   : > { %759 = vmatmul.f32.gmra.mxu2 %v687_v41  ;;  %782 = vmatmul.f32.gmra.mxu3 %v689_v42 }
  0xbf   : > { %v485_v45 = vpop.f32.mrf.mxu2 }
  0xc2   : > { %v439_v43 = vpop.f32.mrf.mxu0  ;;  %v508_v46 = vpop.f32.mrf.mxu3 }
  0xc3   : > { %v509_v61 = vadd.f32 %v508_v46, %v485_v45 }
  0xc5   : > { %v462_v44 = vpop.f32.mrf.mxu1 }
  0xc6   : > { %v463_v57 = vadd.f32 %v462_v44, %v439_v43 }
  0xc8   : > { %v488_v49 = vpop.f32.mrf.mxu2 }
  0xcb   : > { %v511_v50 = vpop.f32.mrf.mxu3 }
  0xcc   : > { %v512_v8 = vadd.f32 %v511_v50, %v488_v49 }
  0xce   : > { %v442_v47 = vpop.f32.mrf.mxu0 }
  0xd1   : > { %v465_v48 = vpop.f32.mrf.mxu1 }
  0xd2   : > { %v466_v0 = vadd.f32 %v465_v48, %v442_v47  ;;  %v813_v48 = vlaneseq }
  0xd4   : > { %v577_v53 = vpop.f32.mrf.mxu2  ;;  %vm815_vm3 = vcmp.lt.s32.totalorder %v813_v48, 256 }
  0xd5   : > { %v578_v4 = vadd.f32 %v577_v53, %v509_v61 }
  0xd7   : > { %v600_v54 = vpop.f32.mrf.mxu3 }
  0xd8   : > { %v531_v51 = vpop.f32.mrf.mxu0  ;;  %v601_v9 = vadd.f32 %v600_v54, %v578_v4 }
  0xd9   : > { %v532_v58 = vadd.f32 %v531_v51, %v463_v57 }
  0xdb   : > { %v554_v52 = vpop.f32.mrf.mxu1 }
  0xdc   : > { %v555_v1 = vadd.f32 %v554_v52, %v532_v58 }
  0xde   : > { %v580_v59 = vpop.f32.mrf.mxu2 }
  0xdf   : > { %v581_v17 = vadd.f32 %v580_v59, %v512_v8 }
  0xe1   : > { %v603_v60 = vpop.f32.mrf.mxu3 }
  0xe2   : > { %v534_v55 = vpop.f32.mrf.mxu0  ;;  %v604_v26 = vadd.f32 %v603_v60, %v581_v17 }
  0xe3   : > { %v535_v5 = vadd.f32 %v534_v55, %v466_v0 }
  0xe4   : > { %v557_v56 = vpop.f32.mrf.mxu1 }
  0xe5   : > { %v558_v13 = vadd.f32 %v557_v56, %v535_v5 }
  0xf1   : > { %v711_v62 = vpop.f32.mrf.mxu0  ;;  %v734_v63 = vpop.f32.mrf.mxu1 }
  0xf2   : > { %v735_v2 = vadd.f32 %v734_v63, %v711_v62 }
  0xf4   : > { %v786_v3 = vadd.f32 %v735_v2, %v555_v1 }
  0xf6   : > { %790 = vst [vmem:[%s1763_s28] sm:$0xff] %v786_v3  ;;  %v818_v18 = vmul.f32 %v786_v3, %v786_v3 }
  0xf8   : > { %v757_v6 = vpop.f32.mrf.mxu2  ;;  %v780_v7 = vpop.f32.mrf.mxu3 }
  0xf9   : > { %v781_v10 = vadd.f32 %v780_v7, %v757_v6  ;;  %v714_v11 = vpop.f32.mrf.mxu0  ;;  %v737_v12 = vpop.f32.mrf.mxu1 }
  0xfa   : > { %v738_v14 = vadd.f32 %v737_v12, %v714_v11 }
  0xfb   : > { %v787_v15 = vadd.f32 %v781_v10, %v601_v9 }
  0xfc   : > { %v788_v16 = vadd.f32 %v738_v14, %v558_v13 }
  0xfd   : > { %791 = vst [vmem:[%s1763_s28 + $0x8] sm:$0xff] %v787_v15  ;;  %v819_v32 = vmul.f32 %v787_v15, %v787_v15 }
  0xfe   : > { %792 = vst [vmem:[%s1763_s28 + $0x10] sm:$0xff] %v788_v16  ;;  %v794_v20 = vadd.f32 %v788_v16, %v786_v3  ;;  %v820_v21 = vmul.f32 %v788_v16, %v788_v16 }
 0x100   : > { %v795_v22 = vrot.slane %v794_v20, 4  ;;  %v822_v23 = vadd.f32 %v820_v21, %v818_v18  ;;  %v760_v24 = vpop.f32.mrf.mxu2  ;;  %v783_v25 = vpop.f32.mrf.mxu3 }
 0x101   : > { %v784_v27 = vadd.f32 %v783_v25, %v760_v24 }
 0x102   : > { %v823_v29 = vrot.slane %v822_v23, 4  ;;  %v796_v30 = vadd.f32 %v795_v22, %v794_v20 }
 0x103   : > { %v789_v31 = vadd.f32 %v784_v27, %v604_v26 }
 0x104   : > { %v824_v19 = vadd.f32 %v823_v29, %v822_v23  ;;  %v797_v34 = vrot.slane %v796_v30, 2 }
 0x105   : > { %793 = vst [vmem:[%s1763_s28 + $0x18] sm:$0xff] %v789_v31  ;;  %v801_v28 = vadd.f32 %v789_v31, %v787_v15  ;;  %v821_v33 = vmul.f32 %v789_v31, %v789_v31 }
 0x106   : > { %v825_v37 = vrot.slane %v824_v19, 2  ;;  %v798_v40 = vadd.f32 %v797_v34, %v796_v30 }
 0x107   : > { %v802_v35 = vrot.slane %v801_v28, 4  ;;  %v829_v36 = vadd.f32 %v821_v33, %v819_v32 }
 0x108   : > { %v826_v43 = vadd.f32 %v825_v37, %v824_v19  ;;  %v799_v46 = vrot.slane %v798_v40, 1 }
 0x109   : > { %v803_v38 = vadd.f32 %v802_v35, %v801_v28  ;;  %v830_v39 = vrot.slane %v829_v36, 4 }
 0x10a   : > { %v827_v50 = vrot.slane %v826_v43, 1  ;;  %v800_v53 = vadd.f32 %v799_v46, %v798_v40 }
 0x10b   : > { %v804_v41 = vrot.slane %v803_v38, 2  ;;  %v831_v42 = vadd.f32 %v830_v39, %v829_v36 }
 0x10c   : > { %v828_v56 = vadd.f32 %v827_v50, %v826_v43 }
 0x10d   : > { %v805_v44 = vadd.f32 %v804_v41, %v803_v38  ;;  %v832_v45 = vrot.slane %v831_v42, 2 }
 0x10f   : > { %v806_v47 = vrot.slane %v805_v44, 1  ;;  %v833_v49 = vadd.f32 %v832_v45, %v831_v42 }
 0x111   : > { %v807_v51 = vadd.f32 %v806_v47, %v805_v44  ;;  %v834_v52 = vrot.slane %v833_v49, 1 }
 0x113   : > { %v810_v54 = vrot.slane %v807_v51, 7  ;;  %v835_v55 = vadd.f32 %v834_v52, %v833_v49 }
 0x115   : > { %v811_v57 = vsel %vm243_vm0, %v800_v53, %v810_v54  ;;  %v838_v58 = vrot.slane %v835_v55, 7 }
 0x116   : > { %817 = vst.msk [vmem:[%s230_s6] ss:$2 sm:$0x3] %vm815_vm3, %v811_v57 }
 0x117   : > { %v839_v59 = vsel %vm243_vm0, %v828_v56, %v838_v58 }
 0x118   : > { %1084 = vst.msk [vmem:[%s230_s6 + $0x1] ss:$2 sm:$0x3] %vm815_vm3, %v839_v59 }
 0x119 PF: > { %s15_s15 = sadd.s32 1, %s1106_s15  }
 0x11a   : > { %p12_p4 = scmp.ge.s32.totalorder %s15_s15, 4  }
 0x11c   :  { %14 = sbr.rel (!%p12_p4) target bundleno = 1 (0x1), region = 80 }

// kernel: up_forward.6
= control target key start
LH: loop header
LB: loop body
LE: loop exit
PB: predicated region body
PF: predicated region fallthrough
CT: control target
= control target key end

     0   :  { %s1163_s18 = smov 0   ;;  %s1821_s0 = inlined_call_operand.vmem [shape: f32[2,16,256], index: 0, kind: input, shape index: {}]   ;;  %s1822_s1 = inlined_call_operand.vmem [shape: f32[1,256], index: 1, kind: input, shape index: {}]   ;;  %s1823_s2 = inlined_call_operand.vmem [shape: f32[1,256], index: 2, kind: input, shape index: {}]   ;;  %s1824_s3 = inlined_call_operand.vmem [shape: f32[3,256,256], index: 3, kind: input, shape index: {}]   ;;  %s1825_s4 = inlined_call_operand.vmem [shape: f32[2,16,256], index: 4, kind: output, shape index: {0}]   ;;  %s1826_s5 = inlined_call_operand.vmem [shape: f32[2,2,256], index: 5, kind: output, shape index: {1}]  }
   0x1 LB: > { %s970_s19 = sadd.s32 4294967295, %s1130_s18   ;;  %p974_p0 = scmp.ge.s32.totalorder %s1130_s18, 1  ;;  %s1130_s18 = sphi %s1163_s18, %s16_s18  }
   0x2   : > { %p190_p1 = scmp.lt.s32.totalorder %s1130_s18, 3 }
   0x4   : > { %p191_p2 = pnand %p974_p0, %p190_p1 }
   0x5   : > { %p1299_p3 = scmp.lt.s32.totalorder (!%p191_p2), %s970_s19, 1 }
   0x6   : > { %194 = sbr.rel (%p191_p2) target bundleno = 281 (0x119), region = 36 }
   0xb   : > { %v1011_v0 = vld [vmem:[%s1824_s3 + $0x2f0] sm:$0xff]  ;;  %v1012_v2 = vld [vmem:[%s1824_s3 + $0x2f8] sm:$0xff]  ;;  %v1009_v4 = vld [vmem:[%s1824_s3 + $0x2e0] sm:$0xff]  ;;  %v1132_v28 = vmov 0.0   ;;  %s1829_s19 = smov (!%p1299_p3, %s970_s19), 1  ;;  %vm284_vm4 = vcmask 1040384  }
   0xc   : > { %v1043_v1 = vld [vmem:[%s1824_s3 + $0x3f0] sm:$0xff]  ;;  %461 = vmatpush.msra.mxu0 %v1011_v0  ;;  %v1044_v3 = vld [vmem:[%s1824_s3 + $0x3f8] sm:$0xff]  ;;  %v1041_v5 = vld [vmem:[%s1824_s3 + $0x3e0] sm:$0xff]  ;;  %507 = vmatpush.msra.mxu2 %v1012_v2  ;;  %274 = vst [vmem:[#allocation2 + $0x28] sm:$0xff] %v1132_v28  ;;  %s1112_s22 = sshll.u32 %s1829_s19, 5  ;;  %vm446_vm5 = vcmask 1046528  }
   0xd   : > { %484 = vmatpush.msra.mxu1 %v1043_v1  ;;  %530 = vmatpush.msra.mxu3 %v1044_v3  ;;  %v1010_v6 = vld [vmem:[%s1824_s3 + $0x2e8] sm:$0xff]  ;;  %v1007_v8 = vld [vmem:[%s1824_s3 + $0x2d0] sm:$0xff]  ;;  %v1008_v10 = vld [vmem:[%s1824_s3 + $0x2d8] sm:$0xff]  ;;  %275 = vst [vmem:[#allocation2 + $0x10] sm:$0xff] %v1132_v28  ;;  %s1384_s14 = scalar_lea.vmem %s1821_s0, %s1112_s22  ;;  %vm718_vm6 = vcmask 1045504   ;;  %s1806_s11 = scalar_lea.vmem %s1825_s4, %s1112_s22 }
   0xe   : > { %v1042_v7 = vld [vmem:[%s1824_s3 + $0x3e8] sm:$0xff]  ;;  %462 = vmatpush.msra.mxu0 %v1009_v4  ;;  %v1039_v9 = vld [vmem:[%s1824_s3 + $0x3d0] sm:$0xff]  ;;  %v1040_v11 = vld [vmem:[%s1824_s3 + $0x3d8] sm:$0xff]  ;;  %508 = vmatpush.msra.mxu2 %v1010_v6  ;;  %278 = vst [vmem:[#allocation2 + $0x18] sm:$0x3] %v1132_v28  ;;  %s1114_s22 = sshll.u32 %s1829_s19, 2 }
   0xf   : > { %485 = vmatpush.msra.mxu1 %v1041_v5  ;;  %531 = vmatpush.msra.mxu3 %v1042_v7  ;;  %v1005_v12 = vld [vmem:[%s1824_s3 + $0x2c0] sm:$0xff]  ;;  %v1006_v14 = vld [vmem:[%s1824_s3 + $0x2c8] sm:$0xff]  ;;  %v1003_v16 = vld [vmem:[%s1824_s3 + $0x2b0] sm:$0xff]  ;;  %279 = vst [vmem:[#allocation2 + $0x20] sm:$0x3] %v1132_v28  ;;  %s237_s15 = scalar_lea.vmem %s1826_s5, %s1114_s22 }
  0x10   : > { %v1037_v13 = vld [vmem:[%s1824_s3 + $0x3c0] sm:$0xff]  ;;  %463 = vmatpush.msra.mxu0 %v1007_v8  ;;  %v1038_v15 = vld [vmem:[%s1824_s3 + $0x3c8] sm:$0xff]  ;;  %509 = vmatpush.msra.mxu2 %v1008_v10  ;;  %v1035_v17 = vld [vmem:[%s1824_s3 + $0x3b0] sm:$0xff] }
  0x11   : > { %486 = vmatpush.msra.mxu1 %v1039_v9  ;;  %532 = vmatpush.msra.mxu3 %v1040_v11  ;;  %v1004_v18 = vld [vmem:[%s1824_s3 + $0x2b8] sm:$0xff]  ;;  %v1001_v20 = vld [vmem:[%s1824_s3 + $0x2a0] sm:$0xff]  ;;  %v1002_v22 = vld [vmem:[%s1824_s3 + $0x2a8] sm:$0xff] }
  0x12   : > { %464 = vmatpush.msra.mxu0 %v1005_v12  ;;  %v1036_v19 = vld [vmem:[%s1824_s3 + $0x3b8] sm:$0xff]  ;;  %510 = vmatpush.msra.mxu2 %v1006_v14  ;;  %v1033_v21 = vld [vmem:[%s1824_s3 + $0x3a0] sm:$0xff]  ;;  %v1034_v23 = vld [vmem:[%s1824_s3 + $0x3a8] sm:$0xff] }
  0x13   : > { %487 = vmatpush.msra.mxu1 %v1037_v13  ;;  %533 = vmatpush.msra.mxu3 %v1038_v15  ;;  %v999_v24 = vld [vmem:[%s1824_s3 + $0x290] sm:$0xff]  ;;  %v1000_v26 = vld [vmem:[%s1824_s3 + $0x298] sm:$0xff]  ;;  %v997_v29 = vld [vmem:[%s1824_s3 + $0x280] sm:$0xff] }
  0x14   : > { %465 = vmatpush.msra.mxu0 %v1003_v16  ;;  %511 = vmatpush.msra.mxu2 %v1004_v18  ;;  %v1031_v25 = vld [vmem:[%s1824_s3 + $0x390] sm:$0xff]  ;;  %v1032_v27 = vld [vmem:[%s1824_s3 + $0x398] sm:$0xff]  ;;  %v1029_v30 = vld [vmem:[%s1824_s3 + $0x380] sm:$0xff] }
  0x15   : > { %488 = vmatpush.msra.mxu1 %v1035_v17  ;;  %534 = vmatpush.msra.mxu3 %v1036_v19  ;;  %v998_v31 = vld [vmem:[%s1824_s3 + $0x288] sm:$0xff]  ;;  %v995_v33 = vld [vmem:[%s1824_s3 + $0x270] sm:$0xff]  ;;  %v996_v35 = vld [vmem:[%s1824_s3 + $0x278] sm:$0xff] }
  0x16   : > { %466 = vmatpush.msra.mxu0 %v1001_v20  ;;  %512 = vmatpush.msra.mxu2 %v1002_v22  ;;  %v1030_v32 = vld [vmem:[%s1824_s3 + $0x388] sm:$0xff]  ;;  %v1027_v34 = vld [vmem:[%s1824_s3 + $0x370] sm:$0xff]  ;;  %v1028_v36 = vld [vmem:[%s1824_s3 + $0x378] sm:$0xff] }
  0x17   : > { %489 = vmatpush.msra.mxu1 %v1033_v21  ;;  %535 = vmatpush.msra.mxu3 %v1034_v23  ;;  %v993_v37 = vld [vmem:[%s1824_s3 + $0x260] sm:$0xff]  ;;  %v994_v39 = vld [vmem:[%s1824_s3 + $0x268] sm:$0xff]  ;;  %v991_v41 = vld [vmem:[%s1824_s3 + $0x250] sm:$0xff] }
  0x18   : > { %467 = vmatpush.msra.mxu0 %v999_v24  ;;  %513 = vmatpush.msra.mxu2 %v1000_v26  ;;  %v1025_v38 = vld [vmem:[%s1824_s3 + $0x360] sm:$0xff]  ;;  %v1026_v40 = vld [vmem:[%s1824_s3 + $0x368] sm:$0xff]  ;;  %v1023_v42 = vld [vmem:[%s1824_s3 + $0x350] sm:$0xff] }
  0x19   : > { %490 = vmatpush.msra.mxu1 %v1031_v25  ;;  %536 = vmatpush.msra.mxu3 %v1032_v27  ;;  %v992_v43 = vld [vmem:[%s1824_s3 + $0x258] sm:$0xff]  ;;  %v989_v45 = vld [vmem:[%s1824_s3 + $0x240] sm:$0xff]  ;;  %v990_v47 = vld [vmem:[%s1824_s3 + $0x248] sm:$0xff] }
  0x1a   : > { %468 = vmatpush.msra.mxu0 %v997_v29  ;;  %514 = vmatpush.msra.mxu2 %v998_v31  ;;  %v1024_v44 = vld [vmem:[%s1824_s3 + $0x358] sm:$0xff]  ;;  %v1021_v46 = vld [vmem:[%s1824_s3 + $0x340] sm:$0xff]  ;;  %v1022_v48 = vld [vmem:[%s1824_s3 + $0x348] sm:$0xff] }
  0x1b   : > { %491 = vmatpush.msra.mxu1 %v1029_v30  ;;  %537 = vmatpush.msra.mxu3 %v1030_v32  ;;  %v987_v49 = vld [vmem:[%s1824_s3 + $0x230] sm:$0xff]  ;;  %v988_v51 = vld [vmem:[%s1824_s3 + $0x238] sm:$0xff]  ;;  %v985_v53 = vld [vmem:[%s1824_s3 + $0x220] sm:$0xff] }
  0x1c   : > { %469 = vmatpush.msra.mxu0 %v995_v33  ;;  %515 = vmatpush.msra.mxu2 %v996_v35  ;;  %v1019_v50 = vld [vmem:[%s1824_s3 + $0x330] sm:$0xff]  ;;  %v1020_v52 = vld [vmem:[%s1824_s3 + $0x338] sm:$0xff]  ;;  %v1017_v54 = vld [vmem:[%s1824_s3 + $0x320] sm:$0xff] }
  0x1d   : > { %492 = vmatpush.msra.mxu1 %v1027_v34  ;;  %538 = vmatpush.msra.mxu3 %v1028_v36  ;;  %v986_v55 = vld [vmem:[%s1824_s3 + $0x228] sm:$0xff]  ;;  %v983_v57 = vld [vmem:[%s1824_s3 + $0x210] sm:$0xff]  ;;  %v984_v59 = vld [vmem:[%s1824_s3 + $0x218] sm:$0xff] }
  0x1e   : > { %470 = vmatpush.msra.mxu0 %v993_v37  ;;  %516 = vmatpush.msra.mxu2 %v994_v39  ;;  %v1018_v56 = vld [vmem:[%s1824_s3 + $0x328] sm:$0xff]  ;;  %v1015_v58 = vld [vmem:[%s1824_s3 + $0x310] sm:$0xff]  ;;  %v1016_v60 = vld [vmem:[%s1824_s3 + $0x318] sm:$0xff] }
  0x1f   : > { %493 = vmatpush.msra.mxu1 %v1025_v38  ;;  %539 = vmatpush.msra.mxu3 %v1026_v40  ;;  %v981_v61 = vld [vmem:[%s1824_s3 + $0x200] sm:$0xff]  ;;  %v982_v63 = vld [vmem:[%s1824_s3 + $0x208] sm:$0xff]  ;;  %v337_v1 = vld [vmem:[%s1824_s3 + $0xf0] sm:$0xff] }
  0x20   : > { %471 = vmatpush.msra.mxu0 %v991_v41  ;;  %517 = vmatpush.msra.mxu2 %v992_v43  ;;  %v1013_v62 = vld [vmem:[%s1824_s3 + $0x300] sm:$0xff]  ;;  %v1014_v0 = vld [vmem:[%s1824_s3 + $0x308] sm:$0xff]  ;;  %v369_v2 = vld [vmem:[%s1824_s3 + $0x1f0] sm:$0xff] }
  0x21   : > { %494 = vmatpush.msra.mxu1 %v1023_v42  ;;  %540 = vmatpush.msra.mxu3 %v1024_v44  ;;  %v338_v3 = vld [vmem:[%s1824_s3 + $0xf8] sm:$0xff]  ;;  %v335_v5 = vld [vmem:[%s1824_s3 + $0xe0] sm:$0xff]  ;;  %v336_v7 = vld [vmem:[%s1824_s3 + $0xe8] sm:$0xff] }
  0x22   : > { %472 = vmatpush.msra.mxu0 %v989_v45  ;;  %518 = vmatpush.msra.mxu2 %v990_v47  ;;  %v370_v4 = vld [vmem:[%s1824_s3 + $0x1f8] sm:$0xff]  ;;  %v367_v6 = vld [vmem:[%s1824_s3 + $0x1e0] sm:$0xff]  ;;  %v240_v9 = vld [vmem:[%s1384_s14 + $0x10] sm:$0xff] }
  0x23   : > { %495 = vmatpush.msra.mxu1 %v1021_v46  ;;  %541 = vmatpush.msra.mxu3 %v1022_v48  ;;  %v238_v8 = vld [vmem:[%s1384_s14] sm:$0xff]  ;;  %v368_v11 = vld [vmem:[%s1824_s3 + $0x1e8] sm:$0xff]  ;;  %v333_v12 = vld [vmem:[%s1824_s3 + $0xd0] sm:$0xff] }
  0x24   : > { %473 = vmatpush.msra.mxu0 %v987_v49  ;;  %519 = vmatpush.msra.mxu2 %v988_v51  ;;  %v242_v10 = vld [vmem:[%s1822_s1] sm:$0x3]  ;;  %v365_v16 = vld [vmem:[%s1824_s3 + $0x1d0] sm:$0xff]  ;;  %v334_v17 = vld [vmem:[%s1824_s3 + $0xd8] sm:$0xff] }
  0x25   : > { %496 = vmatpush.msra.mxu1 %v1019_v50  ;;  %542 = vmatpush.msra.mxu3 %v1020_v52  ;;  %v244_v13 = vperm.slane %v242_v10, 0  ;;  %v252_v14 = vld [vmem:[%s1823_s2] sm:$0x3]  ;;  %v245_v15 = vperm.slane %v242_v10, 1  ;;  %v239_v19 = vld [vmem:[%s1384_s14 + $0x8] sm:$0xff]  ;;  %v366_v21 = vld [vmem:[%s1824_s3 + $0x1d8] sm:$0xff] }
  0x26   : > { %474 = vmatpush.msra.mxu0 %v985_v53  ;;  %520 = vmatpush.msra.mxu2 %v986_v55  ;;  %v254_v18 = vperm.slane %v252_v14, 0  ;;  %v255_v20 = vperm.slane %v252_v14, 1  ;;  %v331_v22 = vld [vmem:[%s1824_s3 + $0xc0] sm:$0xff]  ;;  %v241_v25 = vld [vmem:[%s1384_s14 + $0x18] sm:$0xff]  ;;  %v332_v28 = vld [vmem:[%s1824_s3 + $0xc8] sm:$0xff] }
  0x27   : > { %497 = vmatpush.msra.mxu1 %v1017_v54  ;;  %543 = vmatpush.msra.mxu3 %v1018_v56  ;;  %v248_v23 = vmul.f32 %v244_v13, %v238_v8  ;;  %v250_v24 = vmul.f32 %v244_v13, %v240_v9  ;;  %v249_v26 = vmul.f32 %v245_v15, %v239_v19  ;;  %v363_v27 = vld [vmem:[%s1824_s3 + $0x1c0] sm:$0xff]  ;;  %v364_v29 = vld [vmem:[%s1824_s3 + $0x1c8] sm:$0xff]  ;;  %v329_v31 = vld [vmem:[%s1824_s3 + $0xb0] sm:$0xff] }
  0x28   : > { %475 = vmatpush.msra.mxu0 %v983_v57  ;;  %521 = vmatpush.msra.mxu2 %v984_v59  ;;  %v251_v30 = vmul.f32 %v245_v15, %v241_v25  ;;  %v361_v32 = vld [vmem:[%s1824_s3 + $0x1b0] sm:$0xff]  ;;  %v330_v33 = vld [vmem:[%s1824_s3 + $0xb8] sm:$0xff]  ;;  %v327_v38 = vld [vmem:[%s1824_s3 + $0xa0] sm:$0xff] }
  0x29   : > { %498 = vmatpush.msra.mxu1 %v1015_v58  ;;  %544 = vmatpush.msra.mxu3 %v1016_v60  ;;  %v258_v34 = vadd.f32 %v254_v18, %v248_v23  ;;  %v260_v35 = vadd.f32 %v254_v18, %v250_v24  ;;  %v259_v36 = vadd.f32 %v255_v20, %v249_v26  ;;  %v362_v37 = vld [vmem:[%s1824_s3 + $0x1b8] sm:$0xff]  ;;  %v359_v39 = vld [vmem:[%s1824_s3 + $0x1a0] sm:$0xff]  ;;  %v328_v45 = vld [vmem:[%s1824_s3 + $0xa8] sm:$0xff] }
  0x2a   : > { %476 = vmatpush.msra.mxu0 %v981_v61  ;;  %522 = vmatpush.msra.mxu2 %v982_v63  ;;  %v261_v40 = vadd.f32 %v255_v20, %v251_v30  ;;  %v360_v46 = vld [vmem:[%s1824_s3 + $0x1a8] sm:$0xff]  ;;  %v325_v49 = vld [vmem:[%s1824_s3 + $0x90] sm:$0xff]  ;;  %v326_v55 = vld [vmem:[%s1824_s3 + $0x98] sm:$0xff] }
  0x2b   : > { %499 = vmatpush.msra.mxu1 %v1013_v62  ;;  %545 = vmatpush.msra.mxu3 %v1014_v0  ;;  %vm262_vm0 = vcmp.ge.f32.partialorder %v258_v34, 0.0  ;;  %vm264_vm1 = vcmp.ge.f32.partialorder %v260_v35, 0.0  ;;  %v266_v41 = vmul.f32 0.01, %v258_v34  ;;  %v268_v42 = vmul.f32 0.01, %v260_v35 }
  0x2c   : > { %553 = vmatpush.msrb.mxu0 %v337_v1  ;;  %599 = vmatpush.msrb.mxu2 %v338_v3  ;;  %vm263_vm2 = vcmp.ge.f32.partialorder %v259_v36, 0.0  ;;  %vm265_vm3 = vcmp.ge.f32.partialorder %v261_v40, 0.0  ;;  %v267_v43 = vmul.f32 0.01, %v259_v36  ;;  %v269_v44 = vmul.f32 0.01, %v261_v40 }
  0x2d   : > { %576 = vmatpush.msrb.mxu1 %v369_v2  ;;  %622 = vmatpush.msrb.mxu3 %v370_v4  ;;  %v270_v47 = vsel %vm262_vm0, %v258_v34, %v266_v41  ;;  %v272_v48 = vsel %vm264_vm1, %v260_v35, %v268_v42  ;;  %v357_v50 = vld [vmem:[%s1824_s3 + $0x190] sm:$0xff]  ;;  %v358_v56 = vld [vmem:[%s1824_s3 + $0x198] sm:$0xff]  ;;  %v323_v59 = vld [vmem:[%s1824_s3 + $0x80] sm:$0xff] }
  0x2e   : > { %554 = vmatpush.msrb.mxu0 %v335_v5  ;;  %600 = vmatpush.msrb.mxu2 %v336_v7  ;;  %v285_v51 = vrot.slane %v270_v47, 7  ;;  %v287_v52 = vrot.slane %v272_v48, 7  ;;  %v271_v53 = vsel %vm263_vm2, %v259_v36, %v267_v43  ;;  %v273_v54 = vsel %vm265_vm3, %v261_v40, %v269_v44  ;;  %v355_v60 = vld [vmem:[%s1824_s3 + $0x180] sm:$0xff]  ;;  %v324_v62 = vld [vmem:[%s1824_s3 + $0x88] sm:$0xff]  ;;  %v321_v0 = vld [vmem:[%s1824_s3 + $0x70] sm:$0xff] }
  0x2f   : > { %577 = vmatpush.msrb.mxu1 %v367_v6  ;;  %623 = vmatpush.msrb.mxu3 %v368_v11  ;;  %v286_v57 = vrot.slane %v271_v53, 7  ;;  %v289_v58 = vrot.slane %v273_v54, 7  ;;  %v356_v63 = vld [vmem:[%s1824_s3 + $0x188] sm:$0xff]  ;;  %v353_v1 = vld [vmem:[%s1824_s3 + $0x170] sm:$0xff]  ;;  %v322_v2 = vld [vmem:[%s1824_s3 + $0x78] sm:$0xff] }
  0x30   : > { %555 = vmatpush.msrb.mxu0 %v333_v12  ;;  %601 = vmatpush.msrb.mxu2 %v334_v17  ;;  %v1486_v61 = vsel %vm284_vm4, %v285_v51, %v287_v52  ;;  %297 = vst [vmem:[#allocation2 + $0x28] sm:$0xfe] %v285_v51  ;;  %v354_v3 = vld [vmem:[%s1824_s3 + $0x178] sm:$0xff]  ;;  %v319_v5 = vld [vmem:[%s1824_s3 + $0x60] sm:$0xff]  ;;  %v320_v7 = vld [vmem:[%s1824_s3 + $0x68] sm:$0xff] }
  0x31   : > { %578 = vmatpush.msrb.mxu1 %v365_v16  ;;  %624 = vmatpush.msrb.mxu3 %v366_v21  ;;  %301 = vst [vmem:[#allocation2 + $0x18] sm:$0x1] %v287_v52  ;;  %v1507_v4 = vsel %vm284_vm4, %v286_v57, %v289_v58  ;;  %v351_v6 = vld [vmem:[%s1824_s3 + $0x160] sm:$0xff]  ;;  %v352_v8 = vld [vmem:[%s1824_s3 + $0x168] sm:$0xff]  ;;  %v448_v9 = vrot.slane %v1486_v61, 1  ;;  %v317_v10 = vld [vmem:[%s1824_s3 + $0x50] sm:$0xff] }
  0x32   : > { %556 = vmatpush.msrb.mxu0 %v331_v22  ;;  %602 = vmatpush.msrb.mxu2 %v332_v28  ;;  %298 = vst [vmem:[#allocation2 + $0x10] sm:$0xfe] %v286_v57  ;;  %v349_v11 = vld [vmem:[%s1824_s3 + $0x150] sm:$0xff]  ;;  %v318_v13 = vld [vmem:[%s1824_s3 + $0x58] sm:$0xff]  ;;  %v315_v16 = vld [vmem:[%s1824_s3 + $0x40] sm:$0xff]  ;;  %v451_v17 = vrot.slane %v1507_v4, 1 }
  0x33   : > { %579 = vmatpush.msrb.mxu1 %v363_v27  ;;  %625 = vmatpush.msrb.mxu3 %v364_v29  ;;  %302 = vst [vmem:[#allocation2 + $0x20] sm:$0x1] %v289_v58  ;;  %v350_v14 = vld [vmem:[%s1824_s3 + $0x158] sm:$0xff]  ;;  %v347_v18 = vld [vmem:[%s1824_s3 + $0x140] sm:$0xff]  ;;  %v316_v19 = vld [vmem:[%s1824_s3 + $0x48] sm:$0xff] }
  0x34   : > { %557 = vmatpush.msrb.mxu0 %v329_v31  ;;  %603 = vmatpush.msrb.mxu2 %v330_v33  ;;  %v348_v23 = vld [vmem:[%s1824_s3 + $0x148] sm:$0xff]  ;;  %v313_v25 = vld [vmem:[%s1824_s3 + $0x30] sm:$0xff]  ;;  %v314_v28 = vld [vmem:[%s1824_s3 + $0x38] sm:$0xff] }
  0x35   : > { %580 = vmatpush.msrb.mxu1 %v361_v32  ;;  %626 = vmatpush.msrb.mxu3 %v362_v37  ;;  %v345_v27 = vld [vmem:[%s1824_s3 + $0x130] sm:$0xff]  ;;  %v346_v31 = vld [vmem:[%s1824_s3 + $0x138] sm:$0xff]  ;;  %v311_v32 = vld [vmem:[%s1824_s3 + $0x20] sm:$0xff] }
  0x36   : > { %558 = vmatpush.msrb.mxu0 %v327_v38  ;;  %604 = vmatpush.msrb.mxu2 %v328_v45  ;;  %v343_v33 = vld [vmem:[%s1824_s3 + $0x120] sm:$0xff]  ;;  %v312_v35 = vld [vmem:[%s1824_s3 + $0x28] sm:$0xff]  ;;  %v309_v38 = vld [vmem:[%s1824_s3 + $0x10] sm:$0xff] }
  0x37   : > { %581 = vmatpush.msrb.mxu1 %v359_v39  ;;  %627 = vmatpush.msrb.mxu3 %v360_v46  ;;  %v371_v12 = vld [vmem:[#allocation2 + $0x28] sm:$0xfe]  ;;  %v341_v39 = vld [vmem:[%s1824_s3 + $0x110] sm:$0xff]  ;;  %v310_v40 = vld [vmem:[%s1824_s3 + $0x18] sm:$0xff] }
  0x38   : > { %559 = vmatpush.msrb.mxu0 %v325_v49  ;;  %605 = vmatpush.msrb.mxu2 %v326_v55  ;;  %v447_v15 = vrot.slane %v371_v12, 1  ;;  %v373_v20 = vld [vmem:[#allocation2 + $0x18] sm:$0x1]  ;;  %v344_v36 = vld [vmem:[%s1824_s3 + $0x128] sm:$0xff]  ;;  %v307_v42 = vld [vmem:[%s1824_s3] sm:$0xff] }
  0x39   : > { %582 = vmatpush.msrb.mxu1 %v357_v50  ;;  %628 = vmatpush.msrb.mxu3 %v358_v56  ;;  %v372_v22 = vld [vmem:[#allocation2 + $0x10] sm:$0xfe]  ;;  %v453_v26 = vrot.slane %v373_v20, 1  ;;  %v342_v41 = vld [vmem:[%s1824_s3 + $0x118] sm:$0xff]  ;;  %v339_v44 = vld [vmem:[%s1824_s3 + $0x100] sm:$0xff] }
  0x3a   : > { %560 = vmatpush.msrb.mxu0 %v323_v59  ;;  %606 = vmatpush.msrb.mxu2 %v324_v62  ;;  %v449_v21 = vsel %vm446_vm5, %v447_v15, %v448_v9  ;;  %v450_v24 = vrot.slane %v372_v22, 1  ;;  %v374_v29 = vld [vmem:[#allocation2 + $0x20] sm:$0x1]  ;;  %v308_v45 = vld [vmem:[%s1824_s3 + $0x8] sm:$0xff]  ;;  %v1075_v47 = vld [vmem:[%s1824_s3 + $0x4f0] sm:$0xff] }
  0x3b   : > { %583 = vmatpush.msrb.mxu1 %v355_v60  ;;  %629 = vmatpush.msrb.mxu3 %v356_v63  ;;  %v455_v34 = vrot.slane %v374_v29, 1  ;;  %v454_v37 = vsel %vm446_vm5, %v448_v9, %v453_v26  ;;  %v340_v46 = vld [vmem:[%s1824_s3 + $0x108] sm:$0xff]  ;;  %v1107_v48 = vld [vmem:[%s1824_s3 + $0x5f0] sm:$0xff]  ;;  %v1076_v49 = vld [vmem:[%s1824_s3 + $0x4f8] sm:$0xff] }
  0x3c   : > { %561 = vmatpush.msrb.mxu0 %v321_v0  ;;  %607 = vmatpush.msrb.mxu2 %v322_v2  ;;  %v452_v30 = vsel %vm446_vm5, %v450_v24, %v451_v17  ;;  %v1108_v50 = vld [vmem:[%s1824_s3 + $0x5f8] sm:$0xff]  ;;  %v1105_v51 = vld [vmem:[%s1824_s3 + $0x5e0] sm:$0xff]  ;;  %v303_v52 = vld [vmem:[#allocation2 + $0x28] sm:$0xff] }
  0x3d   : > { %584 = vmatpush.msrb.mxu1 %v353_v1  ;;  %630 = vmatpush.msrb.mxu3 %v354_v3  ;;  %v456_v43 = vsel %vm446_vm5, %v451_v17, %v455_v34  ;;  %v1073_v53 = vld [vmem:[%s1824_s3 + $0x4e0] sm:$0xff]  ;;  %v1074_v54 = vld [vmem:[%s1824_s3 + $0x4e8] sm:$0xff]  ;;  %v1071_v56 = vld [vmem:[%s1824_s3 + $0x4d0] sm:$0xff] }
  0x3e   : > { %562 = vmatpush.msrb.mxu0 %v319_v5  ;;  %608 = vmatpush.msrb.mxu2 %v320_v7  ;;  %v1106_v55 = vld [vmem:[%s1824_s3 + $0x5e8] sm:$0xff]  ;;  %v304_v57 = vld [vmem:[#allocation2 + $0x10] sm:$0xff]  ;;  %v1072_v59 = vld [vmem:[%s1824_s3 + $0x4d8] sm:$0xff] }
  0x3f   : > { %585 = vmatpush.msrb.mxu1 %v351_v6  ;;  %631 = vmatpush.msrb.mxu3 %v352_v8  ;;  %v1103_v58 = vld [vmem:[%s1824_s3 + $0x5d0] sm:$0xff]  ;;  %v1104_v60 = vld [vmem:[%s1824_s3 + $0x5d8] sm:$0xff]  ;;  %v1069_v62 = vld [vmem:[%s1824_s3 + $0x4c0] sm:$0xff] }
  0x40   : > { %563 = vmatpush.msrb.mxu0 %v317_v10  ;;  %609 = vmatpush.msrb.mxu2 %v318_v13  ;;  %v1101_v63 = vld [vmem:[%s1824_s3 + $0x5c0] sm:$0xff]  ;;  %v1070_v0 = vld [vmem:[%s1824_s3 + $0x4c8] sm:$0xff]  ;;  %v1067_v2 = vld [vmem:[%s1824_s3 + $0x4b0] sm:$0xff] }
  0x41   : > { %586 = vmatpush.msrb.mxu1 %v349_v11  ;;  %632 = vmatpush.msrb.mxu3 %v350_v14  ;;  %v1102_v1 = vld [vmem:[%s1824_s3 + $0x5c8] sm:$0xff]  ;;  %v1099_v3 = vld [vmem:[%s1824_s3 + $0x5b0] sm:$0xff]  ;;  %v1068_v5 = vld [vmem:[%s1824_s3 + $0x4b8] sm:$0xff] }
  0x42   : > { %523 = vmatmul.f32.vlgmr.msra.gmra.mxu2 %v449_v21  ;;  %564 = vmatpush.msrb.mxu0 %v315_v16  ;;  %v1100_v6 = vld [vmem:[%s1824_s3 + $0x5b8] sm:$0xff]  ;;  %v1065_v7 = vld [vmem:[%s1824_s3 + $0x4a0] sm:$0xff]  ;;  %v1066_v9 = vld [vmem:[%s1824_s3 + $0x4a8] sm:$0xff] }
  0x43   : > { %587 = vmatpush.msrb.mxu1 %v347_v18  ;;  %610 = vmatpush.msrb.mxu2 %v316_v19  ;;  %v1097_v8 = vld [vmem:[%s1824_s3 + $0x5a0] sm:$0xff]  ;;  %v1098_v10 = vld [vmem:[%s1824_s3 + $0x5a8] sm:$0xff]  ;;  %v1063_v11 = vld [vmem:[%s1824_s3 + $0x490] sm:$0xff] }
  0x44   : > { %633 = vmatpush.msrb.mxu3 %v348_v23  ;;  %477 = vmatmul.f32.vlgmr.msra.gmra.mxu0 %v449_v21  ;;  %v1095_v12 = vld [vmem:[%s1824_s3 + $0x590] sm:$0xff]  ;;  %v1064_v13 = vld [vmem:[%s1824_s3 + $0x498] sm:$0xff]  ;;  %v1061_v15 = vld [vmem:[%s1824_s3 + $0x480] sm:$0xff] }
  0x45   : > { %546 = vmatmul.f32.vlgmr.msra.gmra.mxu3 %v452_v30  ;;  %565 = vmatpush.msrb.mxu0 %v313_v25  ;;  %v1096_v14 = vld [vmem:[%s1824_s3 + $0x598] sm:$0xff]  ;;  %v1093_v16 = vld [vmem:[%s1824_s3 + $0x580] sm:$0xff]  ;;  %v1062_v17 = vld [vmem:[%s1824_s3 + $0x488] sm:$0xff] }
  0x46   : > { %588 = vmatpush.msrb.mxu1 %v345_v27  ;;  %611 = vmatpush.msrb.mxu2 %v314_v28  ;;  %v1094_v18 = vld [vmem:[%s1824_s3 + $0x588] sm:$0xff]  ;;  %v1059_v19 = vld [vmem:[%s1824_s3 + $0x470] sm:$0xff]  ;;  %v1060_v21 = vld [vmem:[%s1824_s3 + $0x478] sm:$0xff] }
  0x47   : > { %634 = vmatpush.msrb.mxu3 %v346_v31  ;;  %500 = vmatmul.f32.vlgmr.msra.gmra.mxu1 %v452_v30  ;;  %v1091_v20 = vld [vmem:[%s1824_s3 + $0x570] sm:$0xff]  ;;  %v1092_v22 = vld [vmem:[%s1824_s3 + $0x578] sm:$0xff]  ;;  %v1089_v23 = vld [vmem:[%s1824_s3 + $0x560] sm:$0xff] }
  0x48   : > { %566 = vmatpush.msrb.mxu0 %v311_v32  ;;  %589 = vmatpush.msrb.mxu1 %v343_v33  ;;  %v1057_v24 = vld [vmem:[%s1824_s3 + $0x460] sm:$0xff]  ;;  %v1058_v25 = vld [vmem:[%s1824_s3 + $0x468] sm:$0xff]  ;;  %v1055_v27 = vld [vmem:[%s1824_s3 + $0x450] sm:$0xff] }
  0x49   : > { %612 = vmatpush.msrb.mxu2 %v312_v35  ;;  %635 = vmatpush.msrb.mxu3 %v344_v36  ;;  %v1090_v26 = vld [vmem:[%s1824_s3 + $0x568] sm:$0xff]  ;;  %v1087_v28 = vld [vmem:[%s1824_s3 + $0x550] sm:$0xff]  ;;  %v1056_v29 = vld [vmem:[%s1824_s3 + $0x458] sm:$0xff] }
  0x4a   : > { %526 = vmatmul.f32.gmra.mxu2 %v454_v37  ;;  %567 = vmatpush.msrb.mxu0 %v309_v38  ;;  %v1088_v30 = vld [vmem:[%s1824_s3 + $0x558] sm:$0xff]  ;;  %v1053_v31 = vld [vmem:[%s1824_s3 + $0x440] sm:$0xff]  ;;  %v1054_v33 = vld [vmem:[%s1824_s3 + $0x448] sm:$0xff] }
  0x4b   : > { %590 = vmatpush.msrb.mxu1 %v341_v39  ;;  %613 = vmatpush.msrb.mxu2 %v310_v40  ;;  %v1085_v32 = vld [vmem:[%s1824_s3 + $0x540] sm:$0xff]  ;;  %v1086_v34 = vld [vmem:[%s1824_s3 + $0x548] sm:$0xff]  ;;  %v1051_v35 = vld [vmem:[%s1824_s3 + $0x430] sm:$0xff] }
  0x4c   : > { %636 = vmatpush.msrb.mxu3 %v342_v41  ;;  %568 = vmatpush.msrb.mxu0 %v307_v42  ;;  %v1083_v36 = vld [vmem:[%s1824_s3 + $0x530] sm:$0xff]  ;;  %v1084_v38 = vld [vmem:[%s1824_s3 + $0x538] sm:$0xff]  ;;  %v645_v39 = vld [vmem:[#allocation2 + $0x28] sm:$0xfc] }
  0x4d   : > { %549 = vmatmul.f32.gmra.mxu3 %v456_v43  ;;  %591 = vmatpush.msrb.mxu1 %v339_v44  ;;  %v646_v40 = vld [vmem:[#allocation2 + $0x10] sm:$0xfc]  ;;  %v1049_v41 = vld [vmem:[%s1824_s3 + $0x420] sm:$0xff]  ;;  %v1082_v44 = vld [vmem:[%s1824_s3 + $0x528] sm:$0xff] }
  0x4e   : > { %614 = vmatpush.msrb.mxu2 %v308_v45  ;;  %637 = vmatpush.msrb.mxu3 %v340_v46  ;;  %v1081_v42 = vld [vmem:[%s1824_s3 + $0x520] sm:$0xff]  ;;  %v1047_v45 = vld [vmem:[%s1824_s3 + $0x410] sm:$0xff] }
  0x4f   : > { %733 = vmatpush.msra.mxu0 %v1075_v47  ;;  %756 = vmatpush.msra.mxu1 %v1107_v48  ;;  %v1079_v46 = vld [vmem:[%s1824_s3 + $0x510] sm:$0xff]  ;;  %v719_v47 = vrot.slane %v645_v39, 2  ;;  %v720_v48 = vrot.slane %v1486_v61, 2 }
  0x50   : > { %779 = vmatpush.msra.mxu2 %v1076_v49  ;;  %802 = vmatpush.msra.mxu3 %v1108_v50  ;;  %v722_v49 = vrot.slane %v646_v40, 2  ;;  %v723_v50 = vrot.slane %v1507_v4, 2 }
  0x51   : > { %480 = vmatmul.f32.gmra.mxu0 %v454_v37  ;;  %757 = vmatpush.msra.mxu1 %v1105_v51  ;;  %v1052_v37 = vld [vmem:[%s1824_s3 + $0x438] sm:$0xff] }
  0x52   : > { %615 = vmatmul.f32.vlgmr.msrb.gmra.mxu2 %v303_v52  ;;  %734 = vmatpush.msra.mxu0 %v1073_v53  ;;  %v1048_v51 = vld [vmem:[%s1824_s3 + $0x418] sm:$0xff]  ;;  %v1046_v53 = vld [vmem:[%s1824_s3 + $0x408] sm:$0xff] }
  0x53   : > { %780 = vmatpush.msra.mxu2 %v1074_v54  ;;  %803 = vmatpush.msra.mxu3 %v1106_v55  ;;  %v1078_v54 = vld [vmem:[%s1824_s3 + $0x508] sm:$0xff]  ;;  %v721_v55 = vsel %vm718_vm6, %v719_v47, %v720_v48 }
  0x54   : > { %503 = vmatmul.f32.gmra.mxu1 %v456_v43  ;;  %735 = vmatpush.msra.mxu0 %v1071_v56  ;;  %v1050_v43 = vld [vmem:[%s1824_s3 + $0x428] sm:$0xff]  ;;  %v724_v56 = vsel %vm718_vm6, %v722_v49, %v723_v50 }
  0x55   : > { %638 = vmatmul.f32.vlgmr.msrb.gmra.mxu3 %v304_v57  ;;  %758 = vmatpush.msra.mxu1 %v1103_v58  ;;  %v648_v58 = vld [vmem:[#allocation2 + $0x20] sm:$0x3] }
  0x56   : > { %781 = vmatpush.msra.mxu2 %v1072_v59  ;;  %804 = vmatpush.msra.mxu3 %v1104_v60  ;;  %v727_v60 = vrot.slane %v648_v58, 2 }
  0x57   : > { %736 = vmatpush.msra.mxu0 %v1069_v62  ;;  %759 = vmatpush.msra.mxu1 %v1101_v63 }
  0x58   : > { %782 = vmatpush.msra.mxu2 %v1070_v0  ;;  %805 = vmatpush.msra.mxu3 %v1102_v1  ;;  %v728_v63 = vsel %vm718_vm6, %v723_v50, %v727_v60 }
  0x59   : > { %737 = vmatpush.msra.mxu0 %v1067_v2  ;;  %760 = vmatpush.msra.mxu1 %v1099_v3 }
  0x5a   : > { %783 = vmatpush.msra.mxu2 %v1068_v5  ;;  %806 = vmatpush.msra.mxu3 %v1100_v6 }
  0x5b   : > { %569 = vmatmul.f32.vlgmr.msrb.gmra.mxu0 %v303_v52  ;;  %618 = vmatmul.f32.gmra.mxu2 %v1486_v61  ;;  %v1080_v52 = vld [vmem:[%s1824_s3 + $0x518] sm:$0xff] }
  0x5c   : > { %738 = vmatpush.msra.mxu0 %v1065_v7  ;;  %761 = vmatpush.msra.mxu1 %v1097_v8 }
  0x5d   : > { %784 = vmatpush.msra.mxu2 %v1066_v9  ;;  %807 = vmatpush.msra.mxu3 %v1098_v10 }
  0x5e   : > { %592 = vmatmul.f32.vlgmr.msrb.gmra.mxu1 %v304_v57  ;;  %641 = vmatmul.f32.gmra.mxu3 %v1507_v4  ;;  %v647_v57 = vld [vmem:[#allocation2 + $0x18] sm:$0x3] }
  0x5f   : > { %739 = vmatpush.msra.mxu0 %v1063_v11  ;;  %762 = vmatpush.msra.mxu1 %v1095_v12  ;;  %v725_v59 = vrot.slane %v647_v57, 2 }
  0x60   : > { %785 = vmatpush.msra.mxu2 %v1064_v13  ;;  %808 = vmatpush.msra.mxu3 %v1096_v14 }
  0x61   : > { %740 = vmatpush.msra.mxu0 %v1061_v15  ;;  %763 = vmatpush.msra.mxu1 %v1093_v16  ;;  %v726_v62 = vsel %vm718_vm6, %v720_v48, %v725_v59 }
  0x62   : > { %786 = vmatpush.msra.mxu2 %v1062_v17  ;;  %809 = vmatpush.msra.mxu3 %v1094_v18 }
  0x63   : > { %741 = vmatpush.msra.mxu0 %v1059_v19  ;;  %764 = vmatpush.msra.mxu1 %v1091_v20 }
  0x64   : > { %787 = vmatpush.msra.mxu2 %v1060_v21  ;;  %810 = vmatpush.msra.mxu3 %v1092_v22 }
  0x65   : > { %572 = vmatmul.f32.gmra.mxu0 %v1486_v61  ;;  %765 = vmatpush.msra.mxu1 %v1089_v23  ;;  %v1045_v61 = vld [vmem:[%s1824_s3 + $0x400] sm:$0xff] }
  0x66   : > { %742 = vmatpush.msra.mxu0 %v1057_v24  ;;  %788 = vmatpush.msra.mxu2 %v1058_v25 }
  0x67   : > { %811 = vmatpush.msra.mxu3 %v1090_v26  ;;  %595 = vmatmul.f32.gmra.mxu1 %v1507_v4  ;;  %v1077_v4 = vld [vmem:[%s1824_s3 + $0x500] sm:$0xff] }
  0x68   : > { %743 = vmatpush.msra.mxu0 %v1055_v27  ;;  %766 = vmatpush.msra.mxu1 %v1087_v28 }
  0x69   : > { %789 = vmatpush.msra.mxu2 %v1056_v29  ;;  %812 = vmatpush.msra.mxu3 %v1088_v30 }
  0x6a   : > { %744 = vmatpush.msra.mxu0 %v1053_v31  ;;  %767 = vmatpush.msra.mxu1 %v1085_v32 }
  0x6b   : > { %790 = vmatpush.msra.mxu2 %v1054_v33  ;;  %813 = vmatpush.msra.mxu3 %v1086_v34 }
  0x6c   : > { %745 = vmatpush.msra.mxu0 %v1051_v35  ;;  %768 = vmatpush.msra.mxu1 %v1083_v36 }
  0x6d   : > { %791 = vmatpush.msra.mxu2 %v1052_v37  ;;  %814 = vmatpush.msra.mxu3 %v1084_v38 }
  0x6e   : > { %746 = vmatpush.msra.mxu0 %v1049_v41  ;;  %769 = vmatpush.msra.mxu1 %v1081_v42 }
  0x6f   : > { %792 = vmatpush.msra.mxu2 %v1050_v43  ;;  %815 = vmatpush.msra.mxu3 %v1082_v44 }
  0x70   : > { %747 = vmatpush.msra.mxu0 %v1047_v45  ;;  %770 = vmatpush.msra.mxu1 %v1079_v46 }
  0x71   : > { %793 = vmatpush.msra.mxu2 %v1048_v51  ;;  %816 = vmatpush.msra.mxu3 %v1080_v52 }
  0x72   : > { %748 = vmatpush.msra.mxu0 %v1045_v61  ;;  %771 = vmatpush.msra.mxu1 %v1077_v4 }
  0x73   : > { %794 = vmatpush.msra.mxu2 %v1046_v53  ;;  %817 = vmatpush.msra.mxu3 %v1078_v54 }
  0x74   : > { %749 = vmatmul.f32.vlgmr.msra.gmra.mxu0 %v721_v55  ;;  %772 = vmatmul.f32.vlgmr.msra.gmra.mxu1 %v724_v56 }
  0x75   : > { %795 = vmatmul.f32.vlgmr.msra.gmra.mxu2 %v721_v55  ;;  %818 = vmatmul.f32.vlgmr.msra.gmra.mxu3 %v724_v56 }
  0x7c   : > { %752 = vmatmul.f32.gmra.mxu0 %v726_v62  ;;  %775 = vmatmul.f32.gmra.mxu1 %v728_v63 }
  0x7d   : > { %798 = vmatmul.f32.gmra.mxu2 %v726_v62  ;;  %821 = vmatmul.f32.gmra.mxu3 %v728_v63 }
  0xc1   : > { %v478_v0 = vpop.f32.mrf.mxu0 }
  0xc4   : > { %v501_v1 = vpop.f32.mrf.mxu1 }
  0xc5   : > { %v524_v2 = vpop.f32.mrf.mxu2  ;;  %v502_v15 = vadd.f32 %v501_v1, %v478_v0 }
  0xc8   : > { %v547_v3 = vpop.f32.mrf.mxu3 }
  0xc9   : > { %v548_v19 = vadd.f32 %v547_v3, %v524_v2 }
  0xcd   : > { %v527_v7 = vpop.f32.mrf.mxu2 }
  0xce   : > { %v481_v5 = vpop.f32.mrf.mxu0 }
  0xd0   : > { %v550_v8 = vpop.f32.mrf.mxu3 }
  0xd1   : > { %v504_v6 = vpop.f32.mrf.mxu1  ;;  %v551_v30 = vadd.f32 %v550_v8, %v527_v7 }
  0xd2   : > { %v505_v22 = vadd.f32 %v504_v6, %v481_v5  ;;  %v852_v6 = vlaneseq }
  0xd4   : > { %vm854_vm7 = vcmp.lt.s32.totalorder %v852_v6, 256 }
  0xd5   : > { %v616_v11 = vpop.f32.mrf.mxu2 }
  0xd6   : > { %v617_v26 = vadd.f32 %v616_v11, %v548_v19 }
  0xd8   : > { %v570_v9 = vpop.f32.mrf.mxu0  ;;  %v639_v12 = vpop.f32.mrf.mxu3 }
  0xd9   : > { %v571_v16 = vadd.f32 %v570_v9, %v502_v15  ;;  %v640_v31 = vadd.f32 %v639_v12, %v617_v26 }
  0xdb   : > { %v593_v10 = vpop.f32.mrf.mxu1 }
  0xdc   : > { %v594_v23 = vadd.f32 %v593_v10, %v571_v16 }
  0xde   : > { %v619_v17 = vpop.f32.mrf.mxu2 }
  0xdf   : > { %v620_v39 = vadd.f32 %v619_v17, %v551_v30 }
  0xe1   : > { %v642_v18 = vpop.f32.mrf.mxu3 }
  0xe2   : > { %v573_v13 = vpop.f32.mrf.mxu0  ;;  %v643_v47 = vadd.f32 %v642_v18, %v620_v39 }
  0xe3   : > { %v574_v27 = vadd.f32 %v573_v13, %v505_v22 }
  0xe4   : > { %v596_v14 = vpop.f32.mrf.mxu1 }
  0xe5   : > { %v597_v35 = vadd.f32 %v596_v14, %v574_v27 }
  0xf1   : > { %v750_v20 = vpop.f32.mrf.mxu0  ;;  %v773_v21 = vpop.f32.mrf.mxu1 }
  0xf2   : > { %v774_v24 = vadd.f32 %v773_v21, %v750_v20 }
  0xf4   : > { %v825_v25 = vadd.f32 %v774_v24, %v594_v23 }
  0xf6   : > { %829 = vst [vmem:[%s1806_s11] sm:$0xff] %v825_v25  ;;  %v857_v40 = vmul.f32 %v825_v25, %v825_v25 }
  0xf8   : > { %v796_v28 = vpop.f32.mrf.mxu2  ;;  %v819_v29 = vpop.f32.mrf.mxu3 }
  0xf9   : > { %v820_v32 = vadd.f32 %v819_v29, %v796_v28  ;;  %v753_v33 = vpop.f32.mrf.mxu0  ;;  %v776_v34 = vpop.f32.mrf.mxu1 }
  0xfa   : > { %v777_v36 = vadd.f32 %v776_v34, %v753_v33 }
  0xfb   : > { %v826_v37 = vadd.f32 %v820_v32, %v640_v31 }
  0xfc   : > { %v827_v38 = vadd.f32 %v777_v36, %v597_v35 }
  0xfd   : > { %830 = vst [vmem:[%s1806_s11 + $0x8] sm:$0xff] %v826_v37  ;;  %v858_v52 = vmul.f32 %v826_v37, %v826_v37 }
  0xfe   : > { %831 = vst [vmem:[%s1806_s11 + $0x10] sm:$0xff] %v827_v38  ;;  %v833_v41 = vadd.f32 %v827_v38, %v825_v25  ;;  %v859_v42 = vmul.f32 %v827_v38, %v827_v38 }
 0x100   : > { %v834_v43 = vrot.slane %v833_v41, 4  ;;  %v861_v44 = vadd.f32 %v859_v42, %v857_v40  ;;  %v799_v45 = vpop.f32.mrf.mxu2  ;;  %v822_v46 = vpop.f32.mrf.mxu3 }
 0x101   : > { %v823_v48 = vadd.f32 %v822_v46, %v799_v45 }
 0x102   : > { %v862_v49 = vrot.slane %v861_v44, 4  ;;  %v835_v50 = vadd.f32 %v834_v43, %v833_v41 }
 0x103   : > { %v828_v51 = vadd.f32 %v823_v48, %v643_v47 }
 0x104   : > { %v863_v61 = vadd.f32 %v862_v49, %v861_v44  ;;  %v836_v54 = vrot.slane %v835_v50, 2 }
 0x105   : > { %832 = vst [vmem:[%s1806_s11 + $0x18] sm:$0xff] %v828_v51  ;;  %v840_v4 = vadd.f32 %v828_v51, %v826_v37  ;;  %v860_v53 = vmul.f32 %v828_v51, %v828_v51 }
 0x106   : > { %v864_v57 = vrot.slane %v863_v61, 2  ;;  %v837_v60 = vadd.f32 %v836_v54, %v835_v50 }
 0x107   : > { %v841_v55 = vrot.slane %v840_v4, 4  ;;  %v868_v56 = vadd.f32 %v860_v53, %v858_v52 }
 0x108   : > { %v865_v0 = vadd.f32 %v864_v57, %v863_v61  ;;  %v838_v3 = vrot.slane %v837_v60, 1 }
 0x109   : > { %v842_v58 = vadd.f32 %v841_v55, %v840_v4  ;;  %v869_v59 = vrot.slane %v868_v56, 4 }
 0x10a   : > { %v866_v8 = vrot.slane %v865_v0, 1  ;;  %v839_v11 = vadd.f32 %v838_v3, %v837_v60 }
 0x10b   : > { %v843_v62 = vrot.slane %v842_v58, 2  ;;  %v870_v63 = vadd.f32 %v869_v59, %v868_v56 }
 0x10c   : > { %v867_v14 = vadd.f32 %v866_v8, %v865_v0 }
 0x10d   : > { %v844_v1 = vadd.f32 %v843_v62, %v842_v58  ;;  %v871_v2 = vrot.slane %v870_v63, 2 }
 0x10f   : > { %v845_v5 = vrot.slane %v844_v1, 1  ;;  %v872_v7 = vadd.f32 %v871_v2, %v870_v63 }
 0x111   : > { %v846_v9 = vadd.f32 %v845_v5, %v844_v1  ;;  %v873_v10 = vrot.slane %v872_v7, 1 }
 0x113   : > { %v849_v12 = vrot.slane %v846_v9, 7  ;;  %v874_v13 = vadd.f32 %v873_v10, %v872_v7 }
 0x115   : > { %v850_v15 = vsel %vm284_vm4, %v839_v11, %v849_v12  ;;  %v877_v16 = vrot.slane %v874_v13, 7 }
 0x116   : > { %856 = vst.msk [vmem:[%s237_s15] ss:$2 sm:$0x3] %vm854_vm7, %v850_v15 }
 0x117   : > { %v878_v17 = vsel %vm284_vm4, %v867_v14, %v877_v16 }
 0x118   : > { %1109 = vst.msk [vmem:[%s237_s15 + $0x1] ss:$2 sm:$0x3] %vm854_vm7, %v878_v17 }
 0x119 PF: > { %s16_s18 = sadd.s32 1, %s1130_s18  }
 0x11a   : > { %p13_p4 = scmp.ge.s32.totalorder %s16_s18, 4  }
 0x11c   :  { %15 = sbr.rel (!%p13_p4) target bundleno = 1 (0x1), region = 81 }

// kernel: up_forward.7
= control target key start
LH: loop header
LB: loop body
LE: loop exit
PB: predicated region body
PF: predicated region fallthrough
CT: control target
= control target key end

     0   :  { %s315_s12 = smov 0   ;;  %s338_s0 = inlined_call_operand.vmem [shape: f32[2,16,256], index: 0, kind: input, shape index: {}]   ;;  %s339_s1 = inlined_call_operand.vmem [shape: f32[1,256], index: 1, kind: input, shape index: {}]   ;;  %s340_s2 = inlined_call_operand.vmem [shape: f32[1,256], index: 2, kind: input, shape index: {}]   ;;  %s341_s3 = inlined_call_operand.vmem [shape: f32[2,16,256], index: 3, kind: output, shape index: {}]  }
   0x1 LB: > { %s266_s13 = sadd.s32 4294967295, %s293_s12   ;;  %p270_p0 = scmp.ge.s32.totalorder %s293_s12, 1  ;;  %s293_s12 = sphi %s315_s12, %s13_s12  }
   0x2   : > { %p137_p1 = scmp.lt.s32.totalorder %s293_s12, 3 }
   0x4   : > { %p138_p2 = pnand %p270_p0, %p137_p1 }
   0x5   : > { %p161_p3 = scmp.lt.s32.totalorder (!%p138_p2), %s266_s13, 1 }
   0x6   : > { %141 = sbr.rel (%p138_p2) target bundleno = 26 (0x1a), region = 32 }
   0xb   : > { %v175_v0 = vld [vmem:[%s339_s1] sm:$0x3]  ;;  %s343_s13 = smov (!%p161_p3, %s266_s13), 1 }
   0xc   : > { %v185_v1 = vld [vmem:[%s340_s2] sm:$0x3]  ;;  %v177_v2 = vperm.slane %v175_v0, 0  ;;  %v178_v3 = vperm.slane %v175_v0, 1  ;;  %s277_s18 = sshll.u32 %s343_s13, 5 }
   0xd   : > { %s165_s21 = scalar_lea.vmem %s338_s0, %s277_s18  ;;  %v187_v4 = vperm.slane %v185_v1, 0  ;;  %v188_v5 = vperm.slane %v185_v1, 1  ;;  %s170_s24 = scalar_lea.vmem %s341_s3, %s277_s18 }
   0xe   : > { %v171_v6 = vld [vmem:[%s165_s21] sm:$0xff]  ;;  %v172_v7 = vld [vmem:[%s165_s21 + $0x8] sm:$0xff]  ;;  %v173_v8 = vld [vmem:[%s165_s21 + $0x10] sm:$0xff] }
   0xf   : > { %v181_v9 = vmul.f32 %v177_v2, %v171_v6  ;;  %v182_v10 = vmul.f32 %v178_v3, %v172_v7  ;;  %v183_v11 = vmul.f32 %v177_v2, %v173_v8  ;;  %v174_v12 = vld [vmem:[%s165_s21 + $0x18] sm:$0xff] }
  0x10   : > { %v184_v13 = vmul.f32 %v178_v3, %v174_v12 }
  0x11   : > { %v191_v14 = vadd.f32 %v187_v4, %v181_v9  ;;  %v192_v15 = vadd.f32 %v188_v5, %v182_v10  ;;  %v193_v16 = vadd.f32 %v187_v4, %v183_v11 }
  0x12   : > { %v194_v17 = vadd.f32 %v188_v5, %v184_v13 }
  0x13   : > { %vm195_vm0 = vcmp.ge.f32.partialorder %v191_v14, 0.0  ;;  %v199_v18 = vmul.f32 0.01, %v191_v14  ;;  %vm196_vm1 = vcmp.ge.f32.partialorder %v192_v15, 0.0  ;;  %v200_v19 = vmul.f32 0.01, %v192_v15 }
  0x14   : > { %vm197_vm2 = vcmp.ge.f32.partialorder %v193_v16, 0.0  ;;  %v201_v20 = vmul.f32 0.01, %v193_v16  ;;  %vm198_vm3 = vcmp.ge.f32.partialorder %v194_v17, 0.0  ;;  %v202_v21 = vmul.f32 0.01, %v194_v17 }
  0x15   : > { %v203_v22 = vsel %vm195_vm0, %v191_v14, %v199_v18  ;;  %v204_v23 = vsel %vm196_vm1, %v192_v15, %v200_v19 }
  0x16   : > { %207 = vst [vmem:[%s170_s24] sm:$0xff] %v203_v22  ;;  %v205_v24 = vsel %vm197_vm2, %v193_v16, %v201_v20  ;;  %v206_v25 = vsel %vm198_vm3, %v194_v17, %v202_v21 }
  0x17   : > { %208 = vst [vmem:[%s170_s24 + $0x8] sm:$0xff] %v204_v23 }
  0x18   : > { %209 = vst [vmem:[%s170_s24 + $0x10] sm:$0xff] %v205_v24 }
  0x19   : > { %210 = vst [vmem:[%s170_s24 + $0x18] sm:$0xff] %v206_v25 }
  0x1a PF: > { %s13_s12 = sadd.s32 1, %s293_s12  }
  0x1b   : > { %p10_p4 = scmp.ge.s32.totalorder %s13_s12, 4  }
  0x1d   :  { %12 = sbr.rel (!%p10_p4) target bundleno = 1 (0x1), region = 62 }

</bundles_post_ra>
